<compile_context>
chip_gen: v7x
topology: tpu7x:2x2x1
jax: 0.10.0
libtpu: 0.0.40
codegen_flags: <defaults>
</compile_context>

<pallas_src>
import functools

import jax
import jax.numpy as jnp
import numpy as np
from jax.experimental import pallas as pl
from jax.experimental.pallas import tpu as pltpu


def _sessionwise_attn_kernel(x_ref, key_gate_ref, qry_slate_ref,
                             wq_ref, wk_ref, wv_ref,
                             bq_ref, bk_ref, bv_ref,
                             wf_ref, bf_ref, out_ref, *, nheads):
    """Masked multi-head self-attention + scalar head for one batch element."""
    N, E = x_ref.shape
    HD = E // nheads
    scale = float(HD) ** -0.5

    x = x_ref[...]                                                   # [N, E]
    # Whole-session QKV projections: one MXU matmul each (hoisted, not per step).
    q = jnp.dot(x, wq_ref[...], preferred_element_type=jnp.float32) + bq_ref[...]
    k = jnp.dot(x, wk_ref[...], preferred_element_type=jnp.float32) + bk_ref[...]
    v = jnp.dot(x, wv_ref[...], preferred_element_type=jnp.float32) + bv_ref[...]

    # Folded (out_layer . out_proj) weight: values become per-key scalars.
    wf = wf_ref[...]                                                 # [1, E]
    vw = v * wf                                                      # [N, E]
    bk_row = bk_ref[...]                                             # [1, E]  zero-item key = b_k
    bvw = bv_ref[...] * wf                                           # [1, E]  zero-item value * wf

    # Combined causal-by-slate + key-padding mask, keys on sublanes / queries on
    # lanes.  key_gate holds the key's slate id, or a huge value for padded keys,
    # so `qry_slate > key_gate` is exactly "query is allowed to attend to key".
    allowed = qry_slate_ref[...] > key_gate_ref[...]                 # [1,N] > [N,1] -> [N,N]
    bias = jnp.where(allowed, 0.0, -1e30)                            # additive mask [N, N]

    total = jnp.zeros((1, N), jnp.float32)
    for h in range(nheads):                                          # static, fully unrolled
        sl = slice(h * HD, (h + 1) * HD)
        qh = q[:, sl]                                                # [N, HD]
        kh = k[:, sl]                                                # [N, HD]
        # scores[key, query]
        s = jnp.einsum("kd,qd->kq", kh, qh,
                       preferred_element_type=jnp.float32) * scale + bias
        # Artificial zero item: key = b_k (zero embedding), never masked.
        z = jnp.einsum("od,qd->oq", bk_row[:, sl], qh,
                       preferred_element_type=jnp.float32) * scale   # [1, N]
        m = jnp.maximum(jnp.max(s, axis=0, keepdims=True), z)        # [1, N]
        p = jnp.exp(s - m)                                           # [N, N] (masked -> 0)
        pz = jnp.exp(z - m)                                          # [1, N]
        denom = jnp.sum(p, axis=0, keepdims=True) + pz               # [1, N]
        vsc = jnp.sum(vw[:, sl], axis=-1, keepdims=True)             # [N, 1] per-key value scalar
        v0 = jnp.sum(bvw[:, sl], axis=-1, keepdims=True)             # [1, 1] zero-item value scalar
        num = jnp.sum(p * vsc, axis=0, keepdims=True) + pz * v0      # [1, N]
        total = total + num / denom

    out_ref[...] = total + bf_ref[...]                               # lane-dense [1, N] store


@functools.partial(jax.jit, static_argnames=("nheads",))
def sessionwise_transformer(item_embs, user_embs, slates_mask, params, nheads=2):
    B, S, K, D = item_embs.shape
    E = 2 * D
    N = S * K

    # stack_embeddings: concat item embedding with the per-slate user embedding
    # broadcast over slate positions, then flatten (S, K) -> N.
    x = jnp.concatenate(
        [item_embs,
         jnp.broadcast_to(user_embs[:, :, None, :], item_embs.shape)],
        axis=-1).reshape(B, N, E).astype(jnp.float32)

    # Per-position slate ids (0-based).  Padded keys get slate id S + 1 so the
    # "strictly earlier slate" test can never pass for them.
    slate_id = jnp.repeat(jnp.arange(S, dtype=jnp.int32), K)                # [N]
    qry_slate = slate_id[None, :]                                           # [1, N]
    key_gate = jnp.where(slates_mask.reshape(B, N), slate_id[None, :],
                         jnp.int32(S + 1)).reshape(B, N, 1)                 # [B, N, 1]

    ipw = params["in_proj_weight"].astype(jnp.float32)                      # [3E, E]
    ipb = params["in_proj_bias"].astype(jnp.float32)                        # [3E]
    wq_t = jnp.transpose(ipw[:E])                                           # [E, E]
    wk_t = jnp.transpose(ipw[E:2 * E])                                      # [E, E]
    wv_t = jnp.transpose(ipw[2 * E:])                                       # [E, E]
    bq = ipb[:E][None, :]
    bk = ipb[E:2 * E][None, :]
    bv = ipb[2 * E:][None, :]
    wo = params["out_proj_weight"].astype(jnp.float32)                      # [E, E]
    bo = params["out_proj_bias"].astype(jnp.float32)                        # [E]
    wl = params["out_layer_weight"].astype(jnp.float32)                     # [1, E]
    bl = params["out_layer_bias"].astype(jnp.float32)                       # [1]
    # Fold out_proj and out_layer into one vector + scalar.
    wf = jnp.dot(wl, wo, precision=jax.lax.Precision.HIGHEST)               # [1, E]
    bf = (jnp.dot(wl, bo, precision=jax.lax.Precision.HIGHEST)
          + bl).reshape(1, 1)                                               # [1, 1]

    out = pl.pallas_call(
        functools.partial(_sessionwise_attn_kernel, nheads=nheads),
        out_shape=jax.ShapeDtypeStruct((B, 1, N), jnp.float32),
        grid_spec=pltpu.PrefetchScalarGridSpec(
            num_scalar_prefetch=0,
            grid=(B,),
            in_specs=[
                pl.BlockSpec((None, N, E), lambda b: (b, 0, 0)),   # x (stacked embeddings)
                pl.BlockSpec((None, N, 1), lambda b: (b, 0, 0)),   # key gate (slate id / pad)
                pl.BlockSpec((1, N), lambda b: (0, 0)),            # query slate ids
                pl.BlockSpec((E, E), lambda b: (0, 0)),            # Wq^T
                pl.BlockSpec((E, E), lambda b: (0, 0)),            # Wk^T
                pl.BlockSpec((E, E), lambda b: (0, 0)),            # Wv^T
                pl.BlockSpec((1, E), lambda b: (0, 0)),            # b_q
                pl.BlockSpec((1, E), lambda b: (0, 0)),            # b_k
                pl.BlockSpec((1, E), lambda b: (0, 0)),            # b_v
                pl.BlockSpec((1, E), lambda b: (0, 0)),            # folded output weight
                pl.BlockSpec((1, 1), lambda b: (0, 0)),            # folded output bias
            ],
            out_specs=pl.BlockSpec((None, 1, N), lambda b: (b, 0, 0)),
        ),
        compiler_params=pltpu.CompilerParams(
            dimension_semantics=("parallel",)),      # batch elements are independent
    )(x, key_gate, qry_slate, wq_t, wk_t, wv_t, bq, bk, bv, wf, bf)

    return out.reshape(B, S, K)


def reference(item_embs, user_embs, slates_mask, params, nheads):
    """Faithful pure-JAX port of SessionwiseTransformer.forward (PyTorch MHA semantics)."""
    B, S, K, D = item_embs.shape
    E = 2 * D
    HD = E // nheads
    N = S * K

    x = jnp.concatenate(
        [item_embs,
         jnp.broadcast_to(user_embs[:, :, None, :], item_embs.shape)],
        axis=-1)
    keys = x.reshape(B, N, E)
    keys = jnp.concatenate([jnp.zeros((B, 1, E), keys.dtype), keys], axis=1)   # add_zero_item
    L = N + 1

    slate_num = jnp.broadcast_to(jnp.arange(S, dtype=jnp.int32)[None, :, None],
                                 (B, S, K)).reshape(B, N) + 1
    slate_num = jnp.concatenate([jnp.zeros((B, 1), slate_num.dtype), slate_num], axis=1)
    pad = jnp.concatenate([jnp.zeros((B, 1), bool), ~slates_mask.reshape(B, N)], axis=1)
    causal = slate_num[:, :, None] <= slate_num[:, None, :]      # True = masked
    causal = causal.at[:, :, 0].set(False)
    masked = causal | pad[:, None, :]                            # [B, L, L]

    ipw, ipb = params["in_proj_weight"], params["in_proj_bias"]
    q = keys @ ipw[:E].T + ipb[:E]
    k = keys @ ipw[E:2 * E].T + ipb[E:2 * E]
    v = keys @ ipw[2 * E:].T + ipb[2 * E:]
    qh = q.reshape(B, L, nheads, HD).transpose(0, 2, 1, 3)
    kh = k.reshape(B, L, nheads, HD).transpose(0, 2, 1, 3)
    vh = v.reshape(B, L, nheads, HD).transpose(0, 2, 1, 3)
    scores = jnp.einsum("bhqd,bhkd->bhqk", qh, kh) / np.sqrt(HD)
    scores = jnp.where(masked[:, None, :, :], -jnp.inf, scores)
    attn = jax.nn.softmax(scores, axis=-1)
    ctx = jnp.einsum("bhqk,bhkd->bhqd", attn, vh)
    ctx = ctx.transpose(0, 2, 1, 3).reshape(B, L, E)
    feat = ctx @ params["out_proj_weight"].T + params["out_proj_bias"]
    feat = feat[:, 1:, :]
    out = feat @ params["out_layer_weight"].T + params["out_layer_bias"]
    return out.reshape(B, S, K)


if __name__ == "__main__":
    B, S, K, D = 2, 8, 16, 32      # batch, session_len, slate_size, embedding_dim
    nheads = 2
    E = 2 * D
    key = jax.random.PRNGKey(0)
    ks = jax.random.split(key, 10)

    item_embs = jax.random.normal(ks[0], (B, S, K, D), jnp.float32)
    user_embs = jax.random.normal(ks[1], (B, S, D), jnp.float32)
    slates_mask = jax.random.uniform(ks[2], (B, S, K)) > 0.2

    scale = 1.0 / float(np.sqrt(E))
    params = dict(
        in_proj_weight=scale * jax.random.normal(ks[3], (3 * E, E), jnp.float32),
        in_proj_bias=scale * jax.random.normal(ks[4], (3 * E,), jnp.float32),
        out_proj_weight=scale * jax.random.normal(ks[5], (E, E), jnp.float32),
        out_proj_bias=scale * jax.random.normal(ks[6], (E,), jnp.float32),
        out_layer_weight=scale * jax.random.normal(ks[7], (1, E), jnp.float32),
        out_layer_bias=scale * jax.random.normal(ks[8], (1,), jnp.float32),
    )

    out = jax.block_until_ready(
        sessionwise_transformer(item_embs, user_embs, slates_mask, params, nheads=nheads))
    assert out.shape == (B, S, K), out.shape

    with jax.default_matmul_precision("highest"):
        ref = reference(item_embs, user_embs, slates_mask, params, nheads)
    np.testing.assert_allclose(np.asarray(out), np.asarray(ref), atol=2e-3, rtol=2e-3)

    print("KERNEL_OK")
</pallas_src>

<mosaic_0001>
module attributes {stable_mosaic.version = 11 : i64} {
  func.func @_sessionwise_attn_kernel(%arg0: i32, %arg1: memref<1x128x64xf32, #tpu.memory_space<vmem>>, %arg2: memref<1x128x1xi32, #tpu.memory_space<vmem>>, %arg3: memref<1x128xi32, #tpu.memory_space<vmem>>, %arg4: memref<64x64xf32, #tpu.memory_space<vmem>>, %arg5: memref<64x64xf32, #tpu.memory_space<vmem>>, %arg6: memref<64x64xf32, #tpu.memory_space<vmem>>, %arg7: memref<1x64xf32, #tpu.memory_space<vmem>>, %arg8: memref<1x64xf32, #tpu.memory_space<vmem>>, %arg9: memref<1x64xf32, #tpu.memory_space<vmem>>, %arg10: memref<1x64xf32, #tpu.memory_space<vmem>>, %arg11: memref<1x1xf32, #tpu.memory_space<vmem>>, %arg12: memref<1x1x128xf32, #tpu.memory_space<vmem>>) attributes {dimension_semantics = [#tpu.dimension_semantics<parallel>], iteration_bounds = array<i64: 2>, scalar_prefetch = 0 : i64, scratch_operands = 0 : i64, tpu.core_type = #tpu.core_type<tc>, window_params = [{transform_indices = @transform_0, window_bounds = array<i64: 1, 128, 64>}, {transform_indices = @transform_1, window_bounds = array<i64: 1, 128, 1>}, {pipeline_mode = #tpu.pipeline_mode<synchronous>, transform_indices = @transform_2, window_bounds = array<i64: 1, 128>}, {pipeline_mode = #tpu.pipeline_mode<synchronous>, transform_indices = @transform_3, window_bounds = array<i64: 64, 64>}, {pipeline_mode = #tpu.pipeline_mode<synchronous>, transform_indices = @transform_4, window_bounds = array<i64: 64, 64>}, {pipeline_mode = #tpu.pipeline_mode<synchronous>, transform_indices = @transform_5, window_bounds = array<i64: 64, 64>}, {pipeline_mode = #tpu.pipeline_mode<synchronous>, transform_indices = @transform_6, window_bounds = array<i64: 1, 64>}, {pipeline_mode = #tpu.pipeline_mode<synchronous>, transform_indices = @transform_7, window_bounds = array<i64: 1, 64>}, {pipeline_mode = #tpu.pipeline_mode<synchronous>, transform_indices = @transform_8, window_bounds = array<i64: 1, 64>}, {pipeline_mode = #tpu.pipeline_mode<synchronous>, transform_indices = @transform_9, window_bounds = array<i64: 1, 64>}, {pipeline_mode = #tpu.pipeline_mode<synchronous>, transform_indices = @transform_10, window_bounds = array<i64: 1, 1>}, {transform_indices = @transform_11, window_bounds = array<i64: 1, 1, 128>}]} {
    %c0 = arith.constant 0 : index
    %c0_0 = arith.constant 0 : index
    %c0_1 = arith.constant 0 : index
    %0 = vector.load %arg1[%c0, %c0_0, %c0_1] : memref<1x128x64xf32, #tpu.memory_space<vmem>>, vector<1x128x64xf32>
    %1 = vector.shape_cast %0 : vector<1x128x64xf32> to vector<128x64xf32>
    %c0_2 = arith.constant 0 : index
    %c0_3 = arith.constant 0 : index
    %2 = vector.load %arg4[%c0_2, %c0_3] : memref<64x64xf32, #tpu.memory_space<vmem>>, vector<64x64xf32>
    %cst = arith.constant dense<0.000000e+00> : vector<128x64xf32>
    %3 = tpu.matmul %1, %2, %cst {dimension_numbers = #tpu.dot_dimension_numbers<[1], [0], [0], [1], [0, 0, 1, 1], [], []>} : vector<128x64xf32>, vector<64x64xf32>, vector<128x64xf32> -> vector<128x64xf32>
    %c0_4 = arith.constant 0 : index
    %c0_5 = arith.constant 0 : index
    %4 = vector.load %arg7[%c0_4, %c0_5] : memref<1x64xf32, #tpu.memory_space<vmem>>, vector<1x64xf32>
    %5 = vector.broadcast %4 : vector<1x64xf32> to vector<128x64xf32>
    %6 = arith.addf %3, %5 : vector<128x64xf32>
    %c0_6 = arith.constant 0 : index
    %c0_7 = arith.constant 0 : index
    %7 = vector.load %arg5[%c0_6, %c0_7] : memref<64x64xf32, #tpu.memory_space<vmem>>, vector<64x64xf32>
    %cst_8 = arith.constant dense<0.000000e+00> : vector<128x64xf32>
    %8 = tpu.matmul %1, %7, %cst_8 {dimension_numbers = #tpu.dot_dimension_numbers<[1], [0], [0], [1], [0, 0, 1, 1], [], []>} : vector<128x64xf32>, vector<64x64xf32>, vector<128x64xf32> -> vector<128x64xf32>
    %c0_9 = arith.constant 0 : index
    %c0_10 = arith.constant 0 : index
    %9 = vector.load %arg8[%c0_9, %c0_10] : memref<1x64xf32, #tpu.memory_space<vmem>>, vector<1x64xf32>
    %10 = vector.broadcast %9 : vector<1x64xf32> to vector<128x64xf32>
    %11 = arith.addf %8, %10 : vector<128x64xf32>
    %c0_11 = arith.constant 0 : index
    %c0_12 = arith.constant 0 : index
    %12 = vector.load %arg6[%c0_11, %c0_12] : memref<64x64xf32, #tpu.memory_space<vmem>>, vector<64x64xf32>
    %cst_13 = arith.constant dense<0.000000e+00> : vector<128x64xf32>
    %13 = tpu.matmul %1, %12, %cst_13 {dimension_numbers = #tpu.dot_dimension_numbers<[1], [0], [0], [1], [0, 0, 1, 1], [], []>} : vector<128x64xf32>, vector<64x64xf32>, vector<128x64xf32> -> vector<128x64xf32>
    %c0_14 = arith.constant 0 : index
    %c0_15 = arith.constant 0 : index
    %14 = vector.load %arg9[%c0_14, %c0_15] : memref<1x64xf32, #tpu.memory_space<vmem>>, vector<1x64xf32>
    %15 = vector.broadcast %14 : vector<1x64xf32> to vector<128x64xf32>
    %16 = arith.addf %13, %15 : vector<128x64xf32>
    %c0_16 = arith.constant 0 : index
    %c0_17 = arith.constant 0 : index
    %17 = vector.load %arg10[%c0_16, %c0_17] : memref<1x64xf32, #tpu.memory_space<vmem>>, vector<1x64xf32>
    %18 = vector.broadcast %17 : vector<1x64xf32> to vector<128x64xf32>
    %19 = arith.mulf %16, %18 : vector<128x64xf32>
    %c0_18 = arith.constant 0 : index
    %c0_19 = arith.constant 0 : index
    %20 = vector.load %arg8[%c0_18, %c0_19] : memref<1x64xf32, #tpu.memory_space<vmem>>, vector<1x64xf32>
    %c0_20 = arith.constant 0 : index
    %c0_21 = arith.constant 0 : index
    %21 = vector.load %arg9[%c0_20, %c0_21] : memref<1x64xf32, #tpu.memory_space<vmem>>, vector<1x64xf32>
    %22 = arith.mulf %21, %17 : vector<1x64xf32>
    %c0_22 = arith.constant 0 : index
    %c0_23 = arith.constant 0 : index
    %23 = vector.load %arg3[%c0_22, %c0_23] : memref<1x128xi32, #tpu.memory_space<vmem>>, vector<1x128xi32>
    %c0_24 = arith.constant 0 : index
    %c0_25 = arith.constant 0 : index
    %c0_26 = arith.constant 0 : index
    %24 = vector.load %arg2[%c0_24, %c0_25, %c0_26] : memref<1x128x1xi32, #tpu.memory_space<vmem>>, vector<1x128x1xi32>
    %25 = vector.shape_cast %24 : vector<1x128x1xi32> to vector<128x1xi32>
    %26 = vector.broadcast %23 : vector<1x128xi32> to vector<128x128xi32>
    %27 = vector.broadcast %25 : vector<128x1xi32> to vector<128x128xi32>
    %28 = arith.cmpi sgt, %26, %27 : vector<128x128xi32>
    %cst_27 = arith.constant 0.000000e+00 : f32
    %cst_28 = arith.constant -1.000000e+30 : f32
    %29 = vector.broadcast %cst_27 : f32 to vector<128x128xf32>
    %30 = vector.broadcast %cst_28 : f32 to vector<128x128xf32>
    %31 = arith.select %28, %29, %30 : vector<128x128xi1>, vector<128x128xf32>
    %cst_29 = arith.constant 0.000000e+00 : f32
    %32 = vector.broadcast %cst_29 : f32 to vector<1x128xf32>
    %33 = vector.extract_strided_slice %6 {offsets = [0, 0], sizes = [128, 32], strides = [1, 1]} : vector<128x64xf32> to vector<128x32xf32>
    %34 = vector.extract_strided_slice %11 {offsets = [0, 0], sizes = [128, 32], strides = [1, 1]} : vector<128x64xf32> to vector<128x32xf32>
    "tpu.trace_start"() <{level = 10 : i32, message = "kd,qd->kq"}> : () -> ()
    %cst_30 = arith.constant dense<0.000000e+00> : vector<128x128xf32>
    %35 = tpu.matmul %34, %33, %cst_30 {dimension_numbers = #tpu.dot_dimension_numbers<[1], [1], [0], [0], [0, 0, 1, 0], [], []>} : vector<128x32xf32>, vector<128x32xf32>, vector<128x128xf32> -> vector<128x128xf32>
    "tpu.trace_stop"() : () -> ()
    %cst_31 = arith.constant 0.176776692 : f32
    %36 = vector.broadcast %cst_31 : f32 to vector<128x128xf32>
    %37 = arith.mulf %35, %36 : vector<128x128xf32>
    %38 = arith.addf %37, %31 : vector<128x128xf32>
    %39 = vector.extract_strided_slice %20 {offsets = [0, 0], sizes = [1, 32], strides = [1, 1]} : vector<1x64xf32> to vector<1x32xf32>
    "tpu.trace_start"() <{level = 10 : i32, message = "od,qd->oq"}> : () -> ()
    %cst_32 = arith.constant dense<0.000000e+00> : vector<1x128xf32>
    %40 = tpu.matmul %39, %33, %cst_32 {dimension_numbers = #tpu.dot_dimension_numbers<[1], [1], [0], [0], [0, 0, 1, 0], [], []>} : vector<1x32xf32>, vector<128x32xf32>, vector<1x128xf32> -> vector<1x128xf32>
    "tpu.trace_stop"() : () -> ()
    %cst_33 = arith.constant 0.176776692 : f32
    %41 = vector.broadcast %cst_33 : f32 to vector<1x128xf32>
    %42 = arith.mulf %40, %41 : vector<1x128xf32>
    %cst_34 = arith.constant dense<0xFF800000> : vector<128xf32>
    %43 = vector.multi_reduction <maximumf>, %38, %cst_34 [0] : vector<128x128xf32> to vector<128xf32>
    %44 = vector.shape_cast %43 : vector<128xf32> to vector<1x128xf32>
    %45 = arith.maximumf %44, %42 : vector<1x128xf32>
    %46 = vector.broadcast %45 : vector<1x128xf32> to vector<128x128xf32>
    %47 = arith.subf %38, %46 : vector<128x128xf32>
    %48 = math.exp %47 : vector<128x128xf32>
    %49 = arith.subf %42, %45 : vector<1x128xf32>
    %50 = math.exp %49 : vector<1x128xf32>
    %cst_35 = arith.constant dense<0.000000e+00> : vector<128xf32>
    %51 = vector.multi_reduction <add>, %48, %cst_35 [0] : vector<128x128xf32> to vector<128xf32>
    %52 = vector.shape_cast %51 : vector<128xf32> to vector<1x128xf32>
    %53 = arith.addf %52, %50 : vector<1x128xf32>
    %54 = vector.extract_strided_slice %19 {offsets = [0, 0], sizes = [128, 32], strides = [1, 1]} : vector<128x64xf32> to vector<128x32xf32>
    %cst_36 = arith.constant dense<0.000000e+00> : vector<128xf32>
    %55 = vector.multi_reduction <add>, %54, %cst_36 [1] : vector<128x32xf32> to vector<128xf32>
    %56 = vector.shape_cast %55 : vector<128xf32> to vector<128x1xf32>
    %57 = vector.extract_strided_slice %22 {offsets = [0, 0], sizes = [1, 32], strides = [1, 1]} : vector<1x64xf32> to vector<1x32xf32>
    %cst_37 = arith.constant dense<0.000000e+00> : vector<1xf32>
    %58 = vector.multi_reduction <add>, %57, %cst_37 [1] : vector<1x32xf32> to vector<1xf32>
    %59 = vector.shape_cast %58 : vector<1xf32> to vector<1x1xf32>
    %60 = vector.broadcast %56 : vector<128x1xf32> to vector<128x128xf32>
    %61 = arith.mulf %48, %60 : vector<128x128xf32>
    %cst_38 = arith.constant dense<0.000000e+00> : vector<128xf32>
    %62 = vector.multi_reduction <add>, %61, %cst_38 [0] : vector<128x128xf32> to vector<128xf32>
    %63 = vector.shape_cast %62 : vector<128xf32> to vector<1x128xf32>
    %64 = vector.broadcast %59 : vector<1x1xf32> to vector<1x128xf32>
    %65 = arith.mulf %50, %64 : vector<1x128xf32>
    %66 = arith.addf %63, %65 : vector<1x128xf32>
    %67 = arith.divf %66, %53 : vector<1x128xf32>
    %68 = arith.addf %32, %67 : vector<1x128xf32>
    %69 = vector.extract_strided_slice %6 {offsets = [0, 32], sizes = [128, 32], strides = [1, 1]} : vector<128x64xf32> to vector<128x32xf32>
    %70 = vector.extract_strided_slice %11 {offsets = [0, 32], sizes = [128, 32], strides = [1, 1]} : vector<128x64xf32> to vector<128x32xf32>
    "tpu.trace_start"() <{level = 10 : i32, message = "kd,qd->kq"}> : () -> ()
    %cst_39 = arith.constant dense<0.000000e+00> : vector<128x128xf32>
    %71 = tpu.matmul %70, %69, %cst_39 {dimension_numbers = #tpu.dot_dimension_numbers<[1], [1], [0], [0], [0, 0, 1, 0], [], []>} : vector<128x32xf32>, vector<128x32xf32>, vector<128x128xf32> -> vector<128x128xf32>
    "tpu.trace_stop"() : () -> ()
    %cst_40 = arith.constant 0.176776692 : f32
    %72 = vector.broadcast %cst_40 : f32 to vector<128x128xf32>
    %73 = arith.mulf %71, %72 : vector<128x128xf32>
    %74 = arith.addf %73, %31 : vector<128x128xf32>
    %75 = vector.extract_strided_slice %20 {offsets = [0, 32], sizes = [1, 32], strides = [1, 1]} : vector<1x64xf32> to vector<1x32xf32>
    "tpu.trace_start"() <{level = 10 : i32, message = "od,qd->oq"}> : () -> ()
    %cst_41 = arith.constant dense<0.000000e+00> : vector<1x128xf32>
    %76 = tpu.matmul %75, %69, %cst_41 {dimension_numbers = #tpu.dot_dimension_numbers<[1], [1], [0], [0], [0, 0, 1, 0], [], []>} : vector<1x32xf32>, vector<128x32xf32>, vector<1x128xf32> -> vector<1x128xf32>
    "tpu.trace_stop"() : () -> ()
    %cst_42 = arith.constant 0.176776692 : f32
    %77 = vector.broadcast %cst_42 : f32 to vector<1x128xf32>
    %78 = arith.mulf %76, %77 : vector<1x128xf32>
    %cst_43 = arith.constant dense<0xFF800000> : vector<128xf32>
    %79 = vector.multi_reduction <maximumf>, %74, %cst_43 [0] : vector<128x128xf32> to vector<128xf32>
    %80 = vector.shape_cast %79 : vector<128xf32> to vector<1x128xf32>
    %81 = arith.maximumf %80, %78 : vector<1x128xf32>
    %82 = vector.broadcast %81 : vector<1x128xf32> to vector<128x128xf32>
    %83 = arith.subf %74, %82 : vector<128x128xf32>
    %84 = math.exp %83 : vector<128x128xf32>
    %85 = arith.subf %78, %81 : vector<1x128xf32>
    %86 = math.exp %85 : vector<1x128xf32>
    %cst_44 = arith.constant dense<0.000000e+00> : vector<128xf32>
    %87 = vector.multi_reduction <add>, %84, %cst_44 [0] : vector<128x128xf32> to vector<128xf32>
    %88 = vector.shape_cast %87 : vector<128xf32> to vector<1x128xf32>
    %89 = arith.addf %88, %86 : vector<1x128xf32>
    %90 = vector.extract_strided_slice %19 {offsets = [0, 32], sizes = [128, 32], strides = [1, 1]} : vector<128x64xf32> to vector<128x32xf32>
    %cst_45 = arith.constant dense<0.000000e+00> : vector<128xf32>
    %91 = vector.multi_reduction <add>, %90, %cst_45 [1] : vector<128x32xf32> to vector<128xf32>
    %92 = vector.shape_cast %91 : vector<128xf32> to vector<128x1xf32>
    %93 = vector.extract_strided_slice %22 {offsets = [0, 32], sizes = [1, 32], strides = [1, 1]} : vector<1x64xf32> to vector<1x32xf32>
    %cst_46 = arith.constant dense<0.000000e+00> : vector<1xf32>
    %94 = vector.multi_reduction <add>, %93, %cst_46 [1] : vector<1x32xf32> to vector<1xf32>
    %95 = vector.shape_cast %94 : vector<1xf32> to vector<1x1xf32>
    %96 = vector.broadcast %92 : vector<128x1xf32> to vector<128x128xf32>
    %97 = arith.mulf %84, %96 : vector<128x128xf32>
    %cst_47 = arith.constant dense<0.000000e+00> : vector<128xf32>
    %98 = vector.multi_reduction <add>, %97, %cst_47 [0] : vector<128x128xf32> to vector<128xf32>
    %99 = vector.shape_cast %98 : vector<128xf32> to vector<1x128xf32>
    %100 = vector.broadcast %95 : vector<1x1xf32> to vector<1x128xf32>
    %101 = arith.mulf %86, %100 : vector<1x128xf32>
    %102 = arith.addf %99, %101 : vector<1x128xf32>
    %103 = arith.divf %102, %89 : vector<1x128xf32>
    %104 = arith.addf %68, %103 : vector<1x128xf32>
    %c0_48 = arith.constant 0 : index
    %c0_49 = arith.constant 0 : index
    %105 = vector.load %arg11[%c0_48, %c0_49] : memref<1x1xf32, #tpu.memory_space<vmem>>, vector<1x1xf32>
    %106 = vector.broadcast %105 : vector<1x1xf32> to vector<1x128xf32>
    %107 = arith.addf %104, %106 : vector<1x128xf32>
    %c0_50 = arith.constant 0 : index
    %c0_51 = arith.constant 0 : index
    %c0_52 = arith.constant 0 : index
    %108 = vector.load %arg12[%c0_50, %c0_51, %c0_52] : memref<1x1x128xf32, #tpu.memory_space<vmem>>, vector<1x1x128xf32>
    %109 = vector.shape_cast %108 : vector<1x1x128xf32> to vector<1x128xf32>
    %110 = vector.shape_cast %107 : vector<1x128xf32> to vector<1x1x128xf32>
    tpu.vector_store %arg12[%c0_50, %c0_51, %c0_52], %110 {strides = array<i32>} : memref<1x1x128xf32, #tpu.memory_space<vmem>>, vector<1x1x128xf32>,
    return
  }
  func.func @transform_0(%arg0: i32) -> (i32, i32, i32) {
    %c0_i32 = arith.constant 0 : i32
    %c0_i32_0 = arith.constant 0 : i32
    %c0_i32_1 = arith.constant 0 : i32
    return %arg0, %c0_i32, %c0_i32_0 : i32, i32, i32
  }
  func.func @transform_1(%arg0: i32) -> (i32, i32, i32) {
    %c0_i32 = arith.constant 0 : i32
    %c0_i32_0 = arith.constant 0 : i32
    %c0_i32_1 = arith.constant 0 : i32
    return %arg0, %c0_i32, %c0_i32_0 : i32, i32, i32
  }
  func.func @transform_2(%arg0: i32) -> (i32, i32) {
    %c0_i32 = arith.constant 0 : i32
    %c0_i32_0 = arith.constant 0 : i32
    %c0_i32_1 = arith.constant 0 : i32
    return %c0_i32, %c0_i32_0 : i32, i32
  }
  func.func @transform_3(%arg0: i32) -> (i32, i32) {
    %c0_i32 = arith.constant 0 : i32
    %c0_i32_0 = arith.constant 0 : i32
    %c0_i32_1 = arith.constant 0 : i32
    return %c0_i32, %c0_i32_0 : i32, i32
  }
  func.func @transform_4(%arg0: i32) -> (i32, i32) {
    %c0_i32 = arith.constant 0 : i32
    %c0_i32_0 = arith.constant 0 : i32
    %c0_i32_1 = arith.constant 0 : i32
    return %c0_i32, %c0_i32_0 : i32, i32
  }
  func.func @transform_5(%arg0: i32) -> (i32, i32) {
    %c0_i32 = arith.constant 0 : i32
    %c0_i32_0 = arith.constant 0 : i32
    %c0_i32_1 = arith.constant 0 : i32
    return %c0_i32, %c0_i32_0 : i32, i32
  }
  func.func @transform_6(%arg0: i32) -> (i32, i32) {
    %c0_i32 = arith.constant 0 : i32
    %c0_i32_0 = arith.constant 0 : i32
    %c0_i32_1 = arith.constant 0 : i32
    return %c0_i32, %c0_i32_0 : i32, i32
  }
  func.func @transform_7(%arg0: i32) -> (i32, i32) {
    %c0_i32 = arith.constant 0 : i32
    %c0_i32_0 = arith.constant 0 : i32
    %c0_i32_1 = arith.constant 0 : i32
    return %c0_i32, %c0_i32_0 : i32, i32
  }
  func.func @transform_8(%arg0: i32) -> (i32, i32) {
    %c0_i32 = arith.constant 0 : i32
    %c0_i32_0 = arith.constant 0 : i32
    %c0_i32_1 = arith.constant 0 : i32
    return %c0_i32, %c0_i32_0 : i32, i32
  }
  func.func @transform_9(%arg0: i32) -> (i32, i32) {
    %c0_i32 = arith.constant 0 : i32
    %c0_i32_0 = arith.constant 0 : i32
    %c0_i32_1 = arith.constant 0 : i32
    return %c0_i32, %c0_i32_0 : i32, i32
  }
  func.func @transform_10(%arg0: i32) -> (i32, i32) {
    %c0_i32 = arith.constant 0 : i32
    %c0_i32_0 = arith.constant 0 : i32
    %c0_i32_1 = arith.constant 0 : i32
    return %c0_i32, %c0_i32_0 : i32, i32
  }
  func.func @transform_11(%arg0: i32) -> (i32, i32, i32) {
    %c0_i32 = arith.constant 0 : i32
    %c0_i32_0 = arith.constant 0 : i32
    %c0_i32_1 = arith.constant 0 : i32
    return %arg0, %c0_i32, %c0_i32_0 : i32, i32, i32
  }
}

</mosaic_0001>

<bundles_post_ra>
// kernel: sessionwise_transformer.1
= control target key start
LH: loop header
LB: loop body
LE: loop exit
PB: predicated region body
PF: predicated region fallthrough
CT: control target
= control target key end

     0   :  { %s3376_s19 = smov 0   ;;  %s4506_s0 = inlined_call_operand.vmem [shape: f32[2,128,64], index: 0, kind: input, shape index: {}]   ;;  %s4507_s1 = inlined_call_operand.vmem [shape: s32[2,128,1], index: 1, kind: input, shape index: {}]   ;;  %s4508_s2 = inlined_call_operand.vmem [shape: s32[1,128], index: 2, kind: input, shape index: {}]   ;;  %s4509_s3 = inlined_call_operand.vmem [shape: f32[64,64], index: 3, kind: input, shape index: {}]   ;;  %s4510_s4 = inlined_call_operand.vmem [shape: f32[64,64], index: 4, kind: input, shape index: {}]   ;;  %s4511_s5 = inlined_call_operand.vmem [shape: f32[64,64], index: 5, kind: input, shape index: {}]   ;;  %s4512_s6 = inlined_call_operand.vmem [shape: f32[1,64], index: 6, kind: input, shape index: {}]   ;;  %s4513_s7 = inlined_call_operand.vmem [shape: f32[1,64], index: 7, kind: input, shape index: {}]   ;;  %s4514_s8 = inlined_call_operand.vmem [shape: f32[1,64], index: 8, kind: input, shape index: {}]   ;;  %s4515_s9 = inlined_call_operand.vmem [shape: f32[1,64], index: 9, kind: input, shape index: {}]   ;;  %s4516_s10 = inlined_call_operand.<no memory space> [shape: f32[1,1], index: 10, kind: input, shape index: {}]   ;;  %s4517_s11 = inlined_call_operand.vmem [shape: f32[2,1,128], index: 11, kind: output, shape index: {}]  }
   0x1   :  { %v16_v0 = vstv %s4516_s10 }
   0x2   :  { %17 = vst [vmem:[#allocation2] sm:$0x1] %v16_v0 }
   0x3 LB: > { %s2330_s20 = sadd.s32 4294967295, %s3305_s19   ;;  %p2334_p0 = scmp.ge.s32.totalorder %s3305_s19, 1  ;;  %s3305_s19 = sphi %s3376_s19, %s23_s19  }
   0x4   : > { %p349_p1 = scmp.lt.s32.totalorder %s3305_s19, 3 }
   0x6   : > { %p350_p2 = pnand %p2334_p0, %p349_p1 }
   0x8   : > { %353 = sbr.rel (%p350_p2) target bundleno = 928 (0x3a0), region = 64 }
   0xf   : > { %v421_v1 = vld [vmem:[%s4509_s3] sm:$0xff]  ;;  %v422_v2 = vld [vmem:[%s4509_s3 + $0x8] sm:$0xff]  ;;  %v423_v3 = vld [vmem:[%s4509_s3 + $0x10] sm:$0xff]  ;;  %p392_p3 = scmp.lt.s32.totalorder %s2330_s20, 1  ;;  %vm436_vm0 = vcmask 523264   ;;  %v3307_v53 = vmov 0.0|0.0   ;;  %v640_v56 = vlaneseq }
  0x10   : > { %v2963_v4 = vpack.c.bf16 %v422_v2, %v421_v1  ;;  %v424_v5 = vld [vmem:[%s4509_s3 + $0x18] sm:$0xff]  ;;  %v425_v7 = vld [vmem:[%s4509_s3 + $0x20] sm:$0xff]  ;;  %v426_v8 = vld [vmem:[%s4509_s3 + $0x28] sm:$0xff]  ;;  %v3308_v54 = vmov 0   ;;  %vm3309_vm1 = vmmov 0   ;;  %v3310_v55 = vmov 0.0  }
  0x11   : > { %v2967_v6 = vpack.c.bf16 %v424_v5, %v423_v3  ;;  %s4532_s20 = smov (!%p392_p3, %s2330_s20), 1  ;;  %v630_v9 = vld [vmem:[%s4510_s4] sm:$0xff]  ;;  %v631_v10 = vld [vmem:[%s4510_s4 + $0x8] sm:$0xff]  ;;  %v632_v11 = vld [vmem:[%s4510_s4 + $0x10] sm:$0xff]  ;;  %v2971_v15 = vpack.c.bf16 %v426_v8, %v425_v7  ;;  %3226 = vset.pattern.permute.xlu0 %v3308_v54  ;;  %3225 = vset.pattern.permute.xlu1 %v3308_v54  ;;  %v641_v57 = vshrl.u32 %v640_v56, 7  ;;  %vm1075_vm2 = vcmask 261120  }
  0x12   : > { %2964 = vmatprep.subr.bf16.mxu0 %v2963_v4  ;;  %v633_v12 = vld [vmem:[%s4510_s4 + $0x18] sm:$0xff]  ;;  %s2489_s10 = sshll.u32 %s4532_s20, 7  ;;  %v2979_v13 = vpack.c.bf16 %v631_v10, %v630_v9  ;;  %v634_v16 = vld [vmem:[%s4510_s4 + $0x20] sm:$0xff]  ;;  %v635_v17 = vld [vmem:[%s4510_s4 + $0x28] sm:$0xff]  ;;  %s3311_s24 = smov 96   ;;  %vm1569_vm4 = vcmask 253952  }
  0x13   : > { %2966 = vmatpush3.bf16.msra.mxu0 %v2963_v4  ;;  %v2983_v14 = vpack.c.bf16 %v633_v12, %v632_v11  ;;  %s3422_s25 = scalar_lea.vmem %s4506_s0, %s2489_s10  ;;  %v427_v18 = vld [vmem:[%s4509_s3 + $0x30] sm:$0xff]  ;;  %v428_v19 = vld [vmem:[%s4509_s3 + $0x38] sm:$0xff]  ;;  %v2987_v21 = vpack.c.bf16 %v635_v17, %v634_v16  ;;  %v790_v25 = vld [vmem:[%s4511_s5] sm:$0xff]  ;;  %v3543_v58 = vsub.s32 0, %v641_v57  ;;  %s3721_s28 = scalar_lea.vmem %s4507_s1, %s2489_s10 }
  0x14   : > { %2968 = vmatprep.subr.bf16.mxu0 %v2967_v6  ;;  %v3437_v20 = vld [vmem:[%s3422_s25] sm:$0xff]  ;;  %2980 = vmatprep.subr.bf16.mxu1 %v2979_v13  ;;  %v2975_v22 = vpack.c.bf16 %v428_v19, %v427_v18  ;;  %v636_v23 = vld [vmem:[%s4510_s4 + $0x30] sm:$0xff]  ;;  %v637_v24 = vld [vmem:[%s4510_s4 + $0x38] sm:$0xff]  ;;  %s404_s17 = scalar_lea.vmem %s4517_s11, %s4532_s20 }
  0x15   : > { %2677 = vmatprep.mubr.msk.f32.mxu0 %vm436_vm0, %v3437_v20  ;;  %2982 = vmatpush3.bf16.msra.mxu1 %v2979_v13  ;;  %v791_v26 = vld [vmem:[%s4511_s5 + $0x8] sm:$0xff]  ;;  %v2991_v27 = vpack.c.bf16 %v637_v24, %v636_v23  ;;  %v792_v29 = vld [vmem:[%s4511_s5 + $0x10] sm:$0xff]  ;;  %v793_v30 = vld [vmem:[%s4511_s5 + $0x18] sm:$0xff] }
  0x16   : > { %2984 = vmatprep.subr.bf16.mxu1 %v2983_v14  ;;  %2717 = vmatprep.mubr.msk.f32.mxu1 %vm436_vm0, %v3437_v20  ;;  %v2995_v28 = vpack.c.bf16 %v791_v26, %v790_v25  ;;  %v3462_v31 = vld [vmem:[%s3422_s25 + $0x8] sm:$0xff]  ;;  %v407_v32 = vld [vmem:[%s3422_s25 + $0x10] sm:$0xff]  ;;  %v2999_v33 = vpack.c.bf16 %v793_v30, %v792_v29  ;;  %v794_v34 = vld [vmem:[%s4511_s5 + $0x20] sm:$0xff] }
  0x17   : > { %2970 = vmatpush3.bf16.msra.mxu0 %v2967_v6  ;;  %v795_v35 = vld [vmem:[%s4511_s5 + $0x28] sm:$0xff]  ;;  %v408_v36 = vld [vmem:[%s3422_s25 + $0x18] sm:$0xff]  ;;  %v409_v37 = vld [vmem:[%s3422_s25 + $0x20] sm:$0xff] }
  0x18   : > { %2972 = vmatprep.subr.bf16.mxu0 %v2971_v15  ;;  %v3003_v38 = vpack.c.bf16 %v795_v35, %v794_v34  ;;  %v796_v39 = vld [vmem:[%s4511_s5 + $0x30] sm:$0xff]  ;;  %v797_v40 = vld [vmem:[%s4511_s5 + $0x38] sm:$0xff]  ;;  %v410_v41 = vld [vmem:[%s3422_s25 + $0x28] sm:$0xff] }
  0x19   : > { %2986 = vmatpush3.bf16.msra.mxu1 %v2983_v14  ;;  %v411_v42 = vld [vmem:[%s3422_s25 + $0x30] sm:$0xff]  ;;  %v3007_v43 = vpack.c.bf16 %v797_v40, %v796_v39  ;;  %v412_v44 = vld [vmem:[%s3422_s25 + $0x38] sm:$0xff]  ;;  %v413_v45 = vld [vmem:[%s3422_s25 + $0x40] sm:$0xff] }
  0x1a   : > { %2988 = vmatprep.subr.bf16.mxu1 %v2987_v21  ;;  %v414_v46 = vld [vmem:[%s3422_s25 + $0x48] sm:$0xff]  ;;  %v415_v47 = vld [vmem:[%s3422_s25 + $0x50] sm:$0xff]  ;;  %v416_v48 = vld [vmem:[%s3422_s25 + $0x58] sm:$0xff] }
  0x1b   : > { %2974 = vmatpush3.bf16.msra.mxu0 %v2971_v15  ;;  %v417_v49 = vld [vmem:[%s3422_s25 + $0x60] sm:$0xff]  ;;  %v418_v50 = vld [vmem:[%s3422_s25 + $0x68] sm:$0xff]  ;;  %v419_v51 = vld [vmem:[%s3422_s25 + $0x70] sm:$0xff] }
  0x1c   : > { %2976 = vmatprep.subr.bf16.mxu0 %v2975_v22  ;;  %v420_v52 = vld [vmem:[%s3422_s25 + $0x78] sm:$0xff]  ;;  %v3548_v59 = vld [vmem:[%s4512_s6] ss:$0 sm:$0xff]  ;;  %vm3563_vm3 = vmpackc.low %vm1075_vm2, %vm1075_vm2 }
  0x1d   : > { %2990 = vmatpush3.bf16.msra.mxu1 %v2987_v21  ;;  %v3553_v60 = vld [vmem:[%s4513_s7] sm:$0x1] }
  0x1e   : > { %2992 = vmatprep.subr.bf16.mxu1 %v2991_v27  ;;  %v3558_v0 = vrot.slane %v3553_v60, %v3543_v58 }
  0x1f   : > { %2978 = vmatpush3.bf16.msra.mxu0 %v2975_v22 }
  0x20   : > { %2996 = vmatprep.subr.bf16.mxu0 %v2995_v28 }
  0x21   : > { %2994 = vmatpush3.bf16.msra.mxu1 %v2991_v27 }
  0x22   : > { %2678 = vmatmul.mubr.msk.f32.vlgmr.msra.gmra.mrb[0].mxu0 %vm436_vm0, %v3462_v31 }
  0x23   : > { %2680 = vmatprep.mubr.msk.f32.mxu0 %vm436_vm0, %v407_v32  ;;  %2998 = vmatpush3.bf16.msra.mxu0 %v2995_v28 }
  0x24   : > { %3000 = vmatprep.subr.bf16.mxu0 %v2999_v33  ;;  %2718 = vmatmul.mubr.msk.f32.vlgmr.msra.gmra.mrb[0].mxu1 %vm436_vm0, %v3462_v31 }
  0x25   : > { %2720 = vmatprep.mubr.msk.f32.mxu1 %vm436_vm0, %v407_v32 }
  0x26   : > { %2681 = vmatmul.mubr.msk.f32.gmra.mrb[2].mxu0 %vm436_vm0, %v408_v36 }
  0x27   : > { %2683 = vmatprep.mubr.msk.f32.mxu0 %vm436_vm0, %v409_v37  ;;  %3002 = vmatpush3.bf16.msra.mxu0 %v2999_v33 }
  0x28   : > { %3004 = vmatprep.subr.bf16.mxu0 %v3003_v38  ;;  %2721 = vmatmul.mubr.msk.f32.gmra.mrb[2].mxu1 %vm436_vm0, %v408_v36 }
  0x29   : > { %2723 = vmatprep.mubr.msk.f32.mxu1 %vm436_vm0, %v409_v37 }
  0x2a   : > { %2684 = vmatmul.mubr.msk.f32.gmra.mrb[4].mxu0 %vm436_vm0, %v410_v41 }
  0x2b   : > { %2686 = vmatprep.mubr.msk.f32.mxu0 %vm436_vm0, %v411_v42  ;;  %3006 = vmatpush3.bf16.msra.mxu0 %v3003_v38 }
  0x2c   : > { %3008 = vmatprep.subr.bf16.mxu0 %v3007_v43  ;;  %2724 = vmatmul.mubr.msk.f32.gmra.mrb[4].mxu1 %vm436_vm0, %v410_v41 }
  0x2d   : > { %2726 = vmatprep.mubr.msk.f32.mxu1 %vm436_vm0, %v411_v42 }
  0x2e   : > { %2687 = vmatmul.mubr.msk.f32.gmra.mrb[6].mxu0 %vm436_vm0, %v412_v44 }
  0x2f   : > { %2689 = vmatprep.mubr.msk.f32.mxu0 %vm436_vm0, %v413_v45  ;;  %3010 = vmatpush3.bf16.msra.mxu0 %v3007_v43 }
  0x30   : > { %2727 = vmatmul.mubr.msk.f32.gmra.mrb[6].mxu1 %vm436_vm0, %v412_v44  ;;  %3059 = vmatprep.subr.bf16.mxu0 %v3307_v53 }
  0x31   : > { %2729 = vmatprep.mubr.msk.f32.mxu1 %vm436_vm0, %v413_v45 }
  0x32   : > { %2690 = vmatmul.mubr.msk.f32.gmra.mrb[8].mxu0 %vm436_vm0, %v414_v46 }
  0x33   : > { %2692 = vmatprep.mubr.msk.f32.mxu0 %vm436_vm0, %v415_v47 }
  0x34   : > { %2730 = vmatmul.mubr.msk.f32.gmra.mrb[8].mxu1 %vm436_vm0, %v414_v46 }
  0x35   : > { %2732 = vmatprep.mubr.msk.f32.mxu1 %vm436_vm0, %v415_v47 }
  0x36   : > { %2693 = vmatmul.mubr.msk.f32.gmra.mrb[10].mxu0 %vm436_vm0, %v416_v48 }
  0x37   : > { %2695 = vmatprep.mubr.msk.f32.mxu0 %vm436_vm0, %v417_v49 }
  0x38   : > { %2733 = vmatmul.mubr.msk.f32.gmra.mrb[10].mxu1 %vm436_vm0, %v416_v48 }
  0x39   : > { %2735 = vmatprep.mubr.msk.f32.mxu1 %vm436_vm0, %v417_v49 }
  0x3a   : > { %2696 = vmatmul.mubr.msk.f32.gmra.mrb[12].mxu0 %vm436_vm0, %v418_v50 }
  0x3b   : > { %2698 = vmatprep.mubr.msk.f32.mxu0 %vm436_vm0, %v419_v51 }
  0x3c   : > { %2736 = vmatmul.mubr.msk.f32.gmra.mrb[12].mxu1 %vm436_vm0, %v418_v50 }
  0x3d   : > { %2738 = vmatprep.mubr.msk.f32.mxu1 %vm436_vm0, %v419_v51 }
  0x3e   : > { %2699 = vmatmul.mubr.msk.f32.gmra.mrb[14].mxu0 %vm436_vm0, %v420_v52 }
  0x3f   : > { %2757 = vmatprep.mubr.msk.f32.mxu0 %vm436_vm0, %v3437_v20 }
  0x40   : > { %2739 = vmatmul.mubr.msk.f32.gmra.mrb[14].mxu1 %vm436_vm0, %v420_v52 }
  0x42   : > { %2758 = vmatmul.mubr.msk.f32.vlgmr.msra.gmra.mrb[16].mxu0 %vm436_vm0, %v3462_v31 }
  0x43   : > { %2760 = vmatprep.mubr.msk.f32.mxu0 %vm436_vm0, %v407_v32 }
  0x46   : > { %2761 = vmatmul.mubr.msk.f32.gmra.mrb[18].mxu0 %vm436_vm0, %v408_v36 }
  0x47   : > { %2763 = vmatprep.mubr.msk.f32.mxu0 %vm436_vm0, %v409_v37 }
  0x4a   : > { %2764 = vmatmul.mubr.msk.f32.gmra.mrb[20].mxu0 %vm436_vm0, %v410_v41 }
  0x4b   : > { %2766 = vmatprep.mubr.msk.f32.mxu0 %vm436_vm0, %v411_v42 }
  0x4e   : > { %2767 = vmatmul.mubr.msk.f32.gmra.mrb[22].mxu0 %vm436_vm0, %v412_v44 }
  0x4f   : > { %2769 = vmatprep.mubr.msk.f32.mxu0 %vm436_vm0, %v413_v45 }
  0x52   : > { %2770 = vmatmul.mubr.msk.f32.gmra.mrb[24].mxu0 %vm436_vm0, %v414_v46 }
  0x53   : > { %2772 = vmatprep.mubr.msk.f32.mxu0 %vm436_vm0, %v415_v47 }
  0x56   : > { %2773 = vmatmul.mubr.msk.f32.gmra.mrb[26].mxu0 %vm436_vm0, %v416_v48 }
  0x57   : > { %2775 = vmatprep.mubr.msk.f32.mxu0 %vm436_vm0, %v417_v49 }
  0x5a   : > { %2776 = vmatmul.mubr.msk.f32.gmra.mrb[28].mxu0 %vm436_vm0, %v418_v50 }
  0x5b   : > { %2778 = vmatprep.mubr.msk.f32.mxu0 %vm436_vm0, %v419_v51 }
  0x5e   : > { %2779 = vmatmul.mubr.msk.f32.gmra.mrb[30].mxu0 %vm436_vm0, %v420_v52 }
  0x5f   : > { %2869 = vmatprep.mubr.msk.f32.mxu0 %vm3309_vm1, %v3310_v55 }
  0xf5   : > { %v2679_v61 = vpop.f32.mrb[0].mxu0 }
  0xf6   : > { %v557_v62 = vadd.f32 %v2679_v61, %v3548_v59  ;;  %v551_v63 = vpop.f32.mrb[1].mxu0 }
  0xf7   : > { %v552_v1 = vadd.f32 %v3548_v59, %v551_v63  ;;  %v3567_v3 = vpop.f32.mrb[0].mxu1 }
  0xf8   : > { %v711_v7 = vpop.f32.mrb[1].mxu1 }
  0xf9   : > { %v3011_v4 = vpack.c.bf16 %v557_v62, %v552_v1  ;;  %v2682_v5 = vpop.f32.mrb[2].mxu0  ;;  %v3185_v6 = vpack.i.bf16 %v557_v62, %v552_v1  ;;  %v3571_v10 = vadd.f32 %v711_v7, %v3558_v0 }
  0xfa   : > { %v567_v8 = vadd.f32 %v2682_v5, %v3548_v59  ;;  %v561_v9 = vpop.f32.mrb[3].mxu0 }
  0xfb   : > { %v562_v11 = vadd.f32 %v3548_v59, %v561_v9  ;;  %3186 = vrot.lane.b32.xlu0 %v3185_v6, %s3311_s24  ;;  %3013 = vmatprep.subr.msk.bf16.mxu1 %vm3563_vm3, %v3011_v4  ;;  %v3581_v12 = vpop.f32.mrb[2].mxu1 }
  0xfc   : > { %3062 = vmatpush3.bf16.xpose.msk.msra.mxu0 %vm3563_vm3, %v3011_v4  ;;  %3016 = vmatpush3.bf16.xpose.msk.msra.mxu1 %vm3563_vm3, %v3011_v4  ;;  %v3586_v16 = vpop.f32.mrb[3].mxu1 }
  0xfd   : > { %v3190_v13 = vpack.i.bf16 %v567_v8, %v562_v11  ;;  %v3017_v14 = vpack.c.bf16 %v567_v8, %v562_v11  ;;  %v2685_v15 = vpop.f32.mrb[4].mxu0  ;;  %3063 = vmatprep.subr.bf16.mxu0 %v3307_v53  ;;  %2813 = vmatprep.mubr.msk.f32.mxu1 %vm1075_vm2, %v3571_v10  ;;  %v722_v11 = vadd.f32 %v3586_v16, %v3558_v0 }
  0xfe   : > { %v577_v17 = vadd.f32 %v2685_v15, %v3548_v59  ;;  %v571_v18 = vpop.f32.mrb[5].mxu0 }
  0xff   : > { %v572_v19 = vadd.f32 %v3548_v59, %v571_v18  ;;  %3191 = vrot.lane.b32.xlu0 %v3190_v13, %s3311_s24  ;;  %3019 = vmatprep.subr.msk.bf16.mxu1 %vm3563_vm3, %v3017_v14  ;;  %v3593_v20 = vpop.f32.mrb[4].mxu1  ;;  %v717_v13 = vadd.f32 %v3567_v3, %v3558_v0  ;;  %v727_v3 = vadd.f32 %v3581_v12, %v3558_v0 }
 0x100   : > { %v3595_v24 = vpop.f32.mrb[5].mxu1  ;;  %v737_v16 = vadd.f32 %v3593_v20, %v3558_v0 }
 0x101   : > { %v3023_v21 = vpack.c.bf16 %v577_v17, %v572_v19  ;;  %v2688_v22 = vpop.f32.mrb[6].mxu0  ;;  %v3195_v23 = vpack.i.bf16 %v577_v17, %v572_v19  ;;  %v732_v17 = vadd.f32 %v3595_v24, %v3558_v0 }
 0x102   : > { %v587_v25 = vadd.f32 %v2688_v22, %v3548_v59  ;;  %v581_v26 = vpop.f32.mrb[7].mxu0 }
 0x103   : > { %v582_v27 = vadd.f32 %v3548_v59, %v581_v26  ;;  %3196 = vrot.lane.b32.xlu1 %v3195_v23, %s3311_s24  ;;  %v3604_v28 = vpop.f32.mrb[6].mxu1  ;;  %v975_v26 = vld [vmem:[%s3721_s28] sm:$0xff] }
 0x104   : > { %3066 = vmatpush3.bf16.xpose.msk.msra.mxu0 %vm3563_vm3, %v3017_v14  ;;  %3022 = vmatpush3.bf16.xpose.msk.msra.mxu1 %vm3563_vm3, %v3017_v14  ;;  %v741_v32 = vpop.f32.mrb[7].mxu1  ;;  %v747_v12 = vadd.f32 %v3604_v28, %v3558_v0  ;;  %v981_v28 = vld [vmem:[%s3721_s28 + $0x30] sm:$0xff] }
 0x105   : > { %v3200_v29 = vpack.i.bf16 %v587_v25, %v582_v27  ;;  %v3029_v30 = vpack.c.bf16 %v587_v25, %v582_v27  ;;  %v2691_v31 = vpop.f32.mrb[8].mxu0  ;;  %3025 = vmatprep.subr.msk.bf16.mxu1 %vm3563_vm3, %v3023_v21  ;;  %3067 = vmatprep.subr.bf16.mxu0 %v3307_v53  ;;  %v976_v25 = vld [vmem:[%s3721_s28 + $0x8] sm:$0xff]  ;;  %v979_v27 = vld [vmem:[%s3721_s28 + $0x20] sm:$0xff] }
 0x106   : > { %v597_v33 = vadd.f32 %v2691_v31, %v3548_v59  ;;  %v591_v34 = vpop.f32.mrb[9].mxu0  ;;  %v983_v31 = vld [vmem:[%s3721_s28 + $0x40] sm:$0xff] }
 0x107   : > { %v592_v35 = vadd.f32 %v3548_v59, %v591_v34  ;;  %3201 = vrot.lane.b32.xlu1 %v3200_v29, %s3311_s24  ;;  %v3612_v36 = vpop.f32.mrb[8].mxu1  ;;  %v987_v34 = vld [vmem:[%s3721_s28 + $0x60] sm:$0xff] }
 0x108   : > { %v751_v40 = vpop.f32.mrb[9].mxu1  ;;  %v757_v20 = vadd.f32 %v3612_v36, %v3558_v0 }
 0x109   : > { %v3205_v37 = vpack.i.bf16 %v597_v33, %v592_v35  ;;  %v3035_v38 = vpack.c.bf16 %v597_v33, %v592_v35  ;;  %v2694_v39 = vpop.f32.mrb[10].mxu0  ;;  %v3676_v18 = vadd.f32 %v751_v40, %v3558_v0  ;;  %v982_v33 = vld [vmem:[%s3721_s28 + $0x38] sm:$0xff]  ;;  %v798_v35 = vld [vmem:[%s4514_s8] sm:$0x1] }
 0x10a   : > { %v607_v41 = vadd.f32 %v2694_v39, %v3548_v59  ;;  %v601_v42 = vpop.f32.mrb[11].mxu0  ;;  %v3768_v36 = vrot.slane %v798_v35, %v3543_v58  ;;  %v950_v39 = vld [vmem:[%s4515_s9] sm:$0x1] }
 0x10b   : > { %v602_v43 = vadd.f32 %v3548_v59, %v601_v42  ;;  %3206 = vrot.lane.b32.xlu0 %v3205_v37, %s3311_s24  ;;  %v3621_v44 = vpop.f32.mrb[10].mxu1  ;;  %v984_v37 = vld [vmem:[%s3721_s28 + $0x48] sm:$0xff] }
 0x10c   : > { %3070 = vmatpush3.bf16.xpose.msk.msra.mxu0 %vm3563_vm3, %v3023_v21  ;;  %3028 = vmatpush3.bf16.xpose.msk.msra.mxu1 %vm3563_vm3, %v3023_v21  ;;  %v761_v48 = vpop.f32.mrb[11].mxu1  ;;  %v767_v22 = vadd.f32 %v3621_v44, %v3558_v0 }
 0x10d   : > { %v3210_v45 = vpack.i.bf16 %v607_v41, %v602_v43  ;;  %v3041_v46 = vpack.c.bf16 %v607_v41, %v602_v43  ;;  %v2697_v47 = vpop.f32.mrb[12].mxu0  ;;  %3031 = vmatprep.subr.msk.bf16.mxu1 %vm3563_vm3, %v3029_v30  ;;  %3071 = vmatprep.subr.bf16.mxu0 %v3307_v53  ;;  %v3690_v19 = vadd.f32 %v761_v48, %v3558_v0  ;;  %v986_v43 = vld [vmem:[%s3721_s28 + $0x58] sm:$0xff] }
 0x10e   : > { %v617_v49 = vadd.f32 %v2697_v47, %v3548_v59  ;;  %v611_v50 = vpop.f32.mrb[13].mxu0  ;;  %v3781_v41 = vrot.slane %v950_v39, %v3543_v58  ;;  %v990_v47 = vld [vmem:[%s3721_s28 + $0x78] sm:$0xff] }
 0x10f   : > { %v612_v51 = vadd.f32 %v3548_v59, %v611_v50  ;;  %3211 = vrot.lane.b32.xlu1 %v3210_v45, %s3311_s24  ;;  %v2737_v52 = vpop.f32.mrb[12].mxu1  ;;  %v988_v45 = vld [vmem:[%s3721_s28 + $0x68] sm:$0xff] }
 0x110   : > { %v771_v61 = vpop.f32.mrb[13].mxu1  ;;  %v777_v23 = vadd.f32 %v2737_v52, %v3558_v0 }
 0x111   : > { %v3215_v54 = vpack.i.bf16 %v617_v49, %v612_v51  ;;  %v3047_v56 = vpack.c.bf16 %v617_v49, %v612_v51  ;;  %v2700_v57 = vpop.f32.mrb[14].mxu0  ;;  %v3698_v21 = vadd.f32 %v771_v61, %v3558_v0 }
 0x112   : > { %v627_v62 = vadd.f32 %v2700_v57, %v3548_v59  ;;  %v621_v63 = vpop.f32.mrb[15].mxu0 }
 0x113   : > { %v622_v1 = vadd.f32 %v3548_v59, %v621_v63  ;;  %3216 = vrot.lane.b32.xlu0 %v3215_v54, %s3311_s24  ;;  %v2740_v4 = vpop.f32.mrb[14].mxu1 }
 0x114   : > { %3074 = vmatpush3.bf16.xpose.msk.msra.mxu0 %vm3563_vm3, %v3029_v30  ;;  %3034 = vmatpush3.bf16.xpose.msk.msra.mxu1 %vm3563_vm3, %v3029_v30  ;;  %v781_v7 = vpop.f32.mrb[15].mxu1  ;;  %v3727_v24 = vadd.f32 %v2740_v4, %v3558_v0  ;;  %v978_v30 = vld [vmem:[%s3721_s28 + $0x18] sm:$0xff] }
 0x115   : > { %v3220_v5 = vpack.i.bf16 %v627_v62, %v622_v1  ;;  %v3053_v6 = vpack.c.bf16 %v627_v62, %v622_v1  ;;  %3037 = vmatprep.subr.msk.bf16.mxu1 %vm3563_vm3, %v3035_v38  ;;  %3075 = vmatprep.subr.bf16.mxu0 %v3307_v53  ;;  %v3639_v8 = vpop.f32.mrb[16].mxu0  ;;  %v3642_v59 = vadd.f32 %v781_v7, %v3558_v0 }
 0x116   : > { %v3644_v9 = vpop.f32.mrb[17].mxu0  ;;  %v877_v49 = vadd.f32 %v3639_v8, %v3768_v36 }
 0x117   : > { %3221 = vrot.lane.b32.xlu1 %v3220_v5, %s3311_s24  ;;  %1615 = vrot.lane.b32.xlu0 %v3571_v10, %s3311_s24  ;;  %v742_v10 = vadd.f32 %v741_v32, %v3558_v0  ;;  %v872_v42 = vadd.f32 %v3644_v9, %v3768_v36 }
 0x118   : > { %v958_v50 = vmul.f32 %v3781_v41, %v877_v49 }
 0x119   : > { %v3653_v14 = vpop.f32.mrb[18].mxu0  ;;  %v957_v44 = vmul.f32 %v3781_v41, %v872_v42 }
 0x11a   : > { %v3655_v15 = vpop.f32.mrb[19].mxu0 }
 0x11b   : > { %1617 = vrot.lane.b32.xlu1 %v717_v13, %s3311_s24  ;;  %1619 = vrot.lane.b32.xlu0 %v722_v11, %s3311_s24 }
 0x11c   : > { %3078 = vmatpush3.bf16.xpose.msk.msra.mxu0 %vm3563_vm3, %v3035_v38  ;;  %3040 = vmatpush3.bf16.xpose.msk.msra.mxu1 %vm3563_vm3, %v3035_v38  ;;  %v989_v38 = vld [vmem:[%s3721_s28 + $0x70] sm:$0xff] }
 0x11d   : > { %3043 = vmatprep.subr.msk.bf16.mxu1 %vm3563_vm3, %v3041_v46  ;;  %3079 = vmatprep.subr.bf16.mxu0 %v3307_v53  ;;  %v3744_v29 = vpop.f32.mrb[20].mxu0 }
 0x11e   : > { %v3752_v32 = vpop.f32.mrb[21].mxu0 }
 0x11f   : > { %1621 = vrot.lane.b32.xlu1 %v727_v3, %s3311_s24  ;;  %1623 = vrot.lane.b32.xlu0 %v732_v17, %s3311_s24 }
 0x121   : > { %v3776_v40 = vpop.f32.mrb[22].mxu0 }
 0x122   : > { %v3808_v51 = vpop.f32.mrb[23].mxu0  ;;  %v907_v42 = vadd.f32 %v3776_v40, %v3768_v36 }
 0x123   : > { %1625 = vrot.lane.b32.xlu1 %v737_v16, %s3311_s24  ;;  %1627 = vrot.lane.b32.xlu0 %v742_v10, %s3311_s24 }
 0x124   : > { %3082 = vmatpush3.bf16.xpose.msk.msra.mxu0 %vm3563_vm3, %v3041_v46  ;;  %3046 = vmatpush3.bf16.xpose.msk.msra.mxu1 %vm3563_vm3, %v3041_v46  ;;  %v3797_v46 = vmul.f32 %v950_v39, %v798_v35  ;;  %v3893_v40 = vmul.f32 %v3781_v41, %v907_v42 }
 0x125   : > { %3049 = vmatprep.subr.msk.bf16.mxu1 %vm3563_vm3, %v3047_v56  ;;  %3083 = vmatprep.subr.bf16.mxu0 %v3307_v53  ;;  %v3811_v52 = vpop.f32.mrb[24].mxu0 }
 0x126   : > { %4523 = vst [vmem:[#allocation3_spill] sm:$0xff] %v3797_v46  ;;  %v2210_v48 = vrot.slane %v3797_v46, %v3543_v58  ;;  %v3813_v54 = vpop.f32.mrb[25].mxu0 }
 0x127   : > { %1629 = vrot.lane.b32.xlu1 %v747_v12, %s3311_s24  ;;  %1631 = vrot.lane.b32.xlu0 %v3676_v18, %s3311_s24 }
 0x12b   : > { %1633 = vrot.lane.b32.xlu1 %v757_v20, %s3311_s24  ;;  %1635 = vrot.lane.b32.xlu0 %v3690_v19, %s3311_s24 }
 0x12c   : > { %3086 = vmatpush3.bf16.xpose.msk.msra.mxu0 %vm3563_vm3, %v3047_v56  ;;  %3052 = vmatpush3.bf16.xpose.msk.msra.mxu1 %vm3563_vm3, %v3047_v56  ;;  %v3815_v56 = vpop.f32.mrb[26].mxu0 }
 0x12d   : > { %3055 = vmatprep.subr.msk.bf16.mxu1 %vm3563_vm3, %v3053_v6  ;;  %3087 = vmatprep.subr.bf16.mxu0 %v3307_v53  ;;  %v3817_v57 = vpop.f32.mrb[27].mxu0 }
 0x12e   : > { %v3819_v61 = vpop.f32.mrb[28].mxu0 }
 0x12f   : > { %1637 = vrot.lane.b32.xlu1 %v767_v22, %s3311_s24  ;;  %1639 = vrot.lane.b32.xlu0 %v3698_v21, %s3311_s24  ;;  %v3821_v62 = vpop.f32.mrb[29].mxu0 }
 0x131   : > { %v3823_v63 = vpop.f32.mrb[30].mxu0 }
 0x133   : > { %1641 = vrot.lane.b32.xlu1 %v777_v23, %s3311_s24  ;;  %1920 = vrot.lane.b32.xlu0 %v3558_v0, %s3311_s24  ;;  %v977_v0 = vld [vmem:[%s3721_s28 + $0x10] sm:$0xff] }
 0x134   : > { %3058 = vmatpush3.bf16.xpose.msk.msra.mxu1 %vm3563_vm3, %v3053_v6  ;;  %3090 = vmatpush3.bf16.xpose.msk.msra.mxu0 %vm3563_vm3, %v3053_v6 }
 0x135   : > { %3139 = vmatprep.subr.bf16.mxu0 %v3307_v53 }
 0x137   : > { %1645 = vrot.lane.b32.xlu1 %v3727_v24, %s3311_s24  ;;  %999 = vperm.xlu0 %3226, %v976_v25   ;;  %v1524_v25 = vsel %vm1075_vm2, %v958_v50, 0.0 }
 0x13b   : > { %996 = vperm.xlu1 %3225, %v975_v26   ;;  %1008 = vperm.xlu0 %3226, %v979_v27  }
 0x13c   : > { %2814 = vmatmul.mubr.msk.f32.vlgmr.msra.gmra.mrb[16].mxu1 %vm1075_vm2, %v717_v13  ;;  %2870 = vmatmul.mubr.msk.f32.vlgmr.msra.gmra.mrb[32].mxu0 %vm1075_vm2, %v3553_v60  ;;  %v980_v60 = vld [vmem:[%s3721_s28 + $0x28] sm:$0xff]  ;;  %v1521_v13 = vsel %vm1075_vm2, %v957_v44, 0.0 }
 0x13d   : > { %2816 = vmatprep.mubr.msk.f32.mxu1 %vm1075_vm2, %v722_v11  ;;  %2960 = vmatprep.mubr.msk.f32.mxu0 %vm3309_vm1, %v3310_v55  ;;  %v985_v55 = vld [vmem:[%s3721_s28 + $0x50] sm:$0xff] }
 0x13f   : > { %1002 = vperm.xlu1 %3225, %v977_v0   ;;  %1014 = vperm.xlu0 %3226, %v981_v28  }
 0x140   : > { %2817 = vmatmul.mubr.msk.f32.gmra.mrb[18].mxu1 %vm1075_vm2, %v727_v3 }
 0x141   : > { %2819 = vmatprep.mubr.msk.f32.mxu1 %vm1075_vm2, %v732_v17 }
 0x143   : > { %1005 = vperm.xlu1 %3225, %v978_v30   ;;  %1020 = vperm.xlu0 %3226, %v983_v31  }
 0x144   : > { %2820 = vmatmul.mubr.msk.f32.gmra.mrb[20].mxu1 %vm1075_vm2, %v737_v16 }
 0x145   : > { %2822 = vmatprep.mubr.msk.f32.mxu1 %vm1075_vm2, %v742_v10 }
 0x147   : > { %1011 = vperm.xlu1 %3225, %v980_v60   ;;  %1026 = vperm.xlu0 %3226, %v985_v55   ;;  %v887_v55 = vadd.f32 %v3653_v14, %v3768_v36 }
 0x148   : > { %2823 = vmatmul.mubr.msk.f32.gmra.mrb[22].mxu1 %vm1075_vm2, %v747_v12 }
 0x149   : > { %2825 = vmatprep.mubr.msk.f32.mxu1 %vm1075_vm2, %v3676_v18  ;;  %v960_v35 = vmul.f32 %v3781_v41, %v887_v55 }
 0x14b   : > { %1017 = vperm.xlu1 %3225, %v982_v33   ;;  %1032 = vperm.xlu0 %3226, %v987_v34   ;;  %v897_v34 = vadd.f32 %v3744_v29, %v3768_v36 }
 0x14c   : > { %2826 = vmatmul.mubr.msk.f32.gmra.mrb[24].mxu1 %vm1075_vm2, %v757_v20 }
 0x14d   : > { %2828 = vmatprep.mubr.msk.f32.mxu1 %vm1075_vm2, %v3690_v19  ;;  %v3879_v39 = vmul.f32 %v3781_v41, %v897_v34 }
 0x14f   : > { %1023 = vperm.xlu1 %3225, %v984_v37   ;;  %1038 = vperm.xlu0 %3226, %v989_v38  }
 0x150   : > { %2829 = vmatmul.mubr.msk.f32.gmra.mrb[26].mxu1 %vm1075_vm2, %v767_v22 }
 0x151   : > { %2831 = vmatprep.mubr.msk.f32.mxu1 %vm1075_vm2, %v3698_v21  ;;  %v882_v21 = vadd.f32 %v3655_v15, %v3768_v36 }
 0x153   : > { %1029 = vperm.xlu1 %3225, %v986_v43   ;;  %1643 = vrot.lane.b32.xlu0 %v3642_v59, %s3311_s24  ;;  %v3853_v26 = vmul.f32 %v3781_v41, %v882_v21 }
 0x154   : > { %2832 = vmatmul.mubr.msk.f32.gmra.mrb[28].mxu1 %vm1075_vm2, %v777_v23 }
 0x155   : > { %2834 = vmatprep.mubr.msk.f32.mxu1 %vm1075_vm2, %v3642_v59 }
 0x157   : > { %1035 = vperm.xlu1 %3225, %v988_v45   ;;  %2110 = vrot.lane.b32.xlu0 %v957_v44, %s3311_s24 }
 0x158   : > { %2835 = vmatmul.mubr.msk.f32.gmra.mrb[30].mxu1 %vm1075_vm2, %v3727_v24 }
 0x15b   : > { %1041 = vperm.xlu1 %3225, %v990_v47   ;;  %v917_v47 = vadd.f32 %v3811_v52, %v3768_v36 }
 0x15f   : > { %2211 = vrot.lane.b32.xlu1 %v2210_v48, %s3311_s24 }
 0x163   : > { %2112 = vrot.lane.b32.xlu1 %v958_v50, %s3311_s24  ;;  %v3900_v50 = vmul.f32 %v3781_v41, %v917_v47 }
 0x16d   : > { %v3187_v1 = vpop.permute.xlu0 %3186 }
 0x16e   : > { %v3189_v4 = vunpack.i.h.bf16 %v3187_v1  ;;  %v3188_v5 = vunpack.i.l.bf16 %v3187_v1  ;;  %v927_v1 = vadd.f32 %v3815_v56, %v3768_v36  ;;  %v937_v56 = vadd.f32 %v3819_v61, %v3768_v36 }
 0x170   : > { %v3091_v6 = vpack.c.bf16 %v3189_v4, %v3188_v5  ;;  %v3912_v5 = vmul.f32 %v3781_v41, %v927_v1 }
 0x171   : > { %v3192_v7 = vpop.permute.xlu0 %3191 }
 0x172   : > { %v3194_v8 = vunpack.i.h.bf16 %v3192_v7  ;;  %v3193_v59 = vunpack.i.l.bf16 %v3192_v7  ;;  %3093 = vmatprep.subr.msk.bf16.mxu1 %vm3563_vm3, %v3091_v6  ;;  %3142 = vmatpush3.bf16.xpose.msk.msra.mxu0 %vm3563_vm3, %v3091_v6  ;;  %v3919_v7 = vmul.f32 %v3781_v41, %v937_v56 }
 0x173   : > { %3096 = vmatpush3.bf16.xpose.msk.msra.mxu1 %vm3563_vm3, %v3091_v6  ;;  %3143 = vmatprep.subr.bf16.mxu0 %v3307_v53 }
 0x174   : > { %v3097_v9 = vpack.c.bf16 %v3194_v8, %v3193_v59  ;;  %v1530_v59 = vsel %vm1075_vm2, %v960_v35, 0.0 }
 0x175   : > { %v3197_v11 = vpop.permute.xlu1 %3196 }
 0x176   : > { %v3199_v17 = vunpack.i.h.bf16 %v3197_v11  ;;  %v3198_v3 = vunpack.i.l.bf16 %v3197_v11  ;;  %1522 = vadd.xlane.f32.xlu0 %v1521_v13  ;;  %3099 = vmatprep.subr.msk.bf16.mxu1 %vm3563_vm3, %v3097_v9 }
 0x178   : > { %v3103_v10 = vpack.c.bf16 %v3199_v17, %v3198_v3 }
 0x179   : > { %v3202_v16 = vpop.permute.xlu1 %3201 }
 0x17a   : > { %3146 = vmatpush3.bf16.xpose.msk.msra.mxu0 %vm3563_vm3, %v3097_v9  ;;  %v3204_v18 = vunpack.i.h.bf16 %v3202_v16  ;;  %v3203_v12 = vunpack.i.l.bf16 %v3202_v16  ;;  %v892_v16 = vadd.f32 %v3752_v32, %v3768_v36 }
 0x17b   : > { %3102 = vmatpush3.bf16.xpose.msk.msra.mxu1 %vm3563_vm3, %v3097_v9  ;;  %3147 = vmatprep.subr.bf16.mxu0 %v3307_v53 }
 0x17c   : > { %3105 = vmatprep.subr.msk.bf16.mxu1 %vm3563_vm3, %v3103_v10  ;;  %v3109_v20 = vpack.c.bf16 %v3204_v18, %v3203_v12 }
 0x17d   : > { %v3207_v19 = vpop.permute.xlu0 %3206 }
 0x17e   : > { %v3209_v23 = vunpack.i.h.bf16 %v3207_v19  ;;  %v3208_v24 = vunpack.i.l.bf16 %v3207_v19  ;;  %v961_v19 = vmul.f32 %v3781_v41, %v892_v16 }
 0x180   : > { %v3115_v0 = vpack.c.bf16 %v3209_v23, %v3208_v24 }
 0x181   : > { %v3212_v28 = vpop.permute.xlu1 %3211 }
 0x182   : > { %3150 = vmatpush3.bf16.xpose.msk.msra.mxu0 %vm3563_vm3, %v3103_v10  ;;  %v3214_v30 = vunpack.i.h.bf16 %v3212_v28  ;;  %v3213_v31 = vunpack.i.l.bf16 %v3212_v28 }
 0x183   : > { %3108 = vmatpush3.bf16.xpose.msk.msra.mxu1 %vm3563_vm3, %v3103_v10  ;;  %3151 = vmatprep.subr.bf16.mxu0 %v3307_v53  ;;  %v3948_v10 = vpop.f32.mrb[31].mxu0 }
 0x184   : > { %3111 = vmatprep.subr.msk.bf16.mxu1 %vm3563_vm3, %v3109_v20  ;;  %v3121_v60 = vpack.c.bf16 %v3214_v30, %v3213_v31  ;;  %v1533_v31 = vsel %vm1075_vm2, %v961_v19, 0.0 }
 0x185   : > { %v3217_v22 = vpop.permute.xlu0 %3216 }
 0x186   : > { %v3219_v37 = vunpack.i.h.bf16 %v3217_v22  ;;  %v3218_v38 = vunpack.i.l.bf16 %v3217_v22 }
 0x187   : > { %1525 = vadd.xlane.f32.xlu1 %v1524_v25 }
 0x188   : > { %v3127_v43 = vpack.c.bf16 %v3219_v37, %v3218_v38 }
 0x189   : > { %v1616_v27 = vpop.permute.xlu0 %1615  ;;  %v3222_v44 = vpop.permute.xlu1 %3221 }
 0x18a   : > { %2904 = vmatprep.mubr.msk.f32.mxu1 %vm1075_vm2, %v1616_v27  ;;  %3154 = vmatpush3.bf16.xpose.msk.msra.mxu0 %vm3563_vm3, %v3109_v20  ;;  %v3224_v29 = vunpack.i.h.bf16 %v3222_v44  ;;  %v3223_v45 = vunpack.i.l.bf16 %v3222_v44 }
 0x18b   : > { %3114 = vmatpush3.bf16.xpose.msk.msra.mxu1 %vm3563_vm3, %v3109_v20  ;;  %3155 = vmatprep.subr.bf16.mxu0 %v3307_v53 }
 0x18c   : > { %2114 = vrot.lane.b32.xlu0 %v3853_v26, %s3311_s24  ;;  %3117 = vmatprep.subr.msk.bf16.mxu1 %vm3563_vm3, %v3115_v0  ;;  %v3133_v49 = vpack.c.bf16 %v3224_v29, %v3223_v45  ;;  %v3312_v29 = vmov -1e+30  }
 0x18d   : > { %v1620_v15 = vpop.permute.xlu0 %1619  ;;  %v1618_v4 = vpop.permute.xlu1 %1617 }
 0x191   : > { %v1624_v33 = vpop.permute.xlu0 %1623  ;;  %v1622_v6 = vpop.permute.xlu1 %1621 }
 0x192   : > { %3158 = vmatpush3.bf16.xpose.msk.msra.mxu0 %vm3563_vm3, %v3115_v0 }
 0x193   : > { %3120 = vmatpush3.bf16.xpose.msk.msra.mxu1 %vm3563_vm3, %v3115_v0  ;;  %3159 = vmatprep.subr.bf16.mxu0 %v3307_v53 }
 0x194   : > { %3123 = vmatprep.subr.msk.bf16.mxu1 %vm3563_vm3, %v3121_v60 }
 0x195   : > { %v1628_v14 = vpop.permute.xlu0 %1627  ;;  %v1626_v9 = vpop.permute.xlu1 %1625 }
 0x198   : > { %2116 = vrot.lane.b32.xlu1 %v960_v35, %s3311_s24 }
 0x199   : > { %v1632_v48 = vpop.permute.xlu0 %1631  ;;  %v1630_v2 = vpop.permute.xlu1 %1629 }
 0x19a   : > { %3162 = vmatpush3.bf16.xpose.msk.msra.mxu0 %vm3563_vm3, %v3121_v60 }
 0x19b   : > { %3126 = vmatpush3.bf16.xpose.msk.msra.mxu1 %vm3563_vm3, %v3121_v60  ;;  %3163 = vmatprep.subr.bf16.mxu0 %v3307_v53 }
 0x19c   : > { %3129 = vmatprep.subr.msk.bf16.mxu1 %vm3563_vm3, %v3127_v43  ;;  %2120 = vrot.lane.b32.xlu1 %v3879_v39, %s3311_s24 }
 0x19d   : > { %v1636_v52 = vpop.permute.xlu0 %1635  ;;  %v1634_v17 = vpop.permute.xlu1 %1633 }
 0x1a0   : > { %2124 = vrot.lane.b32.xlu1 %v3893_v40, %s3311_s24 }
 0x1a1   : > { %v1640_v8 = vpop.permute.xlu0 %1639  ;;  %v1638_v12 = vpop.permute.xlu1 %1637 }
 0x1a2   : > { %3166 = vmatpush3.bf16.xpose.msk.msra.mxu0 %vm3563_vm3, %v3127_v43 }
 0x1a3   : > { %3132 = vmatpush3.bf16.xpose.msk.msra.mxu1 %vm3563_vm3, %v3127_v43  ;;  %3167 = vmatprep.subr.bf16.mxu0 %v3307_v53  ;;  %v947_v53 = vadd.f32 %v3823_v63, %v3768_v36  ;;  %v1527_v63 = vsel %vm1075_vm2, %v3853_v26, 0.0 }
 0x1a4   : > { %3135 = vmatprep.subr.msk.bf16.mxu1 %vm3563_vm3, %v3133_v49  ;;  %2128 = vrot.lane.b32.xlu1 %v3900_v50, %s3311_s24 }
 0x1a5   : > { %v3931_v61 = vmul.f32 %v3781_v41, %v947_v53  ;;  %v1921_v11 = vpop.permute.xlu0 %1920  ;;  %v1642_v21 = vpop.permute.xlu1 %1641 }
 0x1a7   : > { %4524 = vst [vmem:[#allocation4_spill] sm:$0xff] %v3931_v61 }
 0x1a8   : > { %2132 = vrot.lane.b32.xlu1 %v3912_v5, %s3311_s24 }
 0x1a9   : > { %v1646_v32 = vpop.permute.xlu1 %1645 }
 0x1aa   : > { %3170 = vmatpush3.bf16.xpose.msk.msra.mxu0 %vm3563_vm3, %v3133_v49 }
 0x1ab   : > { %1531 = vadd.xlane.f32.xlu0 %v1530_v59  ;;  %3138 = vmatpush3.bf16.xpose.msk.msra.mxu1 %vm3563_vm3, %v3133_v49 }
 0x1ac   : > { %2136 = vrot.lane.b32.xlu1 %v3919_v7, %s3311_s24 }
 0x1af   : > { %1528 = vadd.xlane.f32.xlu0 %v1527_v63 }
 0x1b0   : > { %2140 = vrot.lane.b32.xlu1 %v3931_v61, %s3311_s24 }
 0x1b1   : > { %2961 = vmatmul.mubr.msk.f32.vlgmr.msra.gmra.mrb[34].mxu0 %vm1075_vm2, %v1921_v11 }
 0x1b2   : > { %2905 = vmatmul.mubr.msk.f32.vlgmr.msra.gmra.mrb[32].mxu1 %vm1075_vm2, %v1618_v4 }
 0x1b3   : > { %2907 = vmatprep.mubr.msk.f32.mxu1 %vm1075_vm2, %v1620_v15  ;;  %v1536_v15 = vsel %vm1075_vm2, %v3879_v39, 0.0  ;;  %v3997_v39 = vld [vmem:[%s4508_s2] ss:$0 sm:$0xff] }
 0x1b6   : > { %v1000_v13 = vpop.permute.xlu0 %999  ;;  %2908 = vmatmul.mubr.msk.f32.gmra.mrb[34].mxu1 %vm1075_vm2, %v1622_v6 }
 0x1b7   : > { %2910 = vmatprep.mubr.msk.f32.mxu1 %vm1075_vm2, %v1624_v33  ;;  %v902_v33 = vadd.f32 %v3808_v51, %v3768_v36  ;;  %vm1044_vm6 = vcmp.gt.s32.totalorder %v3997_v39, %v1000_v13 }
 0x1b8   : > { %v4012_v1 = vsel %vm1044_vm6, 0.0, %v3312_v29 }
 0x1b9   : > { %v3985_v35 = vmul.f32 %v3781_v41, %v902_v33 }
 0x1ba   : > { %v3944_v3 = vpop.permute.xlu0 %1008  ;;  %2911 = vmatmul.mubr.msk.f32.gmra.mrb[36].mxu1 %vm1075_vm2, %v1626_v9  ;;  %v997_v25 = vpop.permute.xlu1 %996 }
 0x1bb   : > { %2913 = vmatprep.mubr.msk.f32.mxu1 %vm1075_vm2, %v1628_v14  ;;  %vm1043_vm5 = vcmp.gt.s32.totalorder %v3997_v39, %v997_v25  ;;  %vm1047_vm10 = vcmp.gt.s32.totalorder %v3997_v39, %v3944_v3 }
 0x1bc   : > { %v4008_v45 = vsel %vm1043_vm5, 0.0, %v3312_v29 }
 0x1be   : > { %v3952_v18 = vpop.permute.xlu0 %1014  ;;  %2914 = vmatmul.mubr.msk.f32.gmra.mrb[38].mxu1 %vm1075_vm2, %v1630_v2  ;;  %v1003_v27 = vpop.permute.xlu1 %1002 }
 0x1bf   : > { %2916 = vmatprep.mubr.msk.f32.mxu1 %vm1075_vm2, %v1632_v48  ;;  %vm1045_vm8 = vcmp.gt.s32.totalorder %v3997_v39, %v1003_v27  ;;  %v4046_v27 = vsel %vm1047_vm10, 0.0, %v3312_v29  ;;  %vm1049_vm12 = vcmp.gt.s32.totalorder %v3997_v39, %v3952_v18 }
 0x1c0   : > { %v4027_v59 = vsel %vm1045_vm8, 0.0, %v3312_v29 }
 0x1c2   : > { %v3957_v20 = vpop.permute.xlu0 %1020  ;;  %2917 = vmatmul.mubr.msk.f32.gmra.mrb[40].mxu1 %vm1075_vm2, %v1634_v17  ;;  %v1006_v0 = vpop.permute.xlu1 %1005 }
 0x1c3   : > { %2919 = vmatprep.mubr.msk.f32.mxu1 %vm1075_vm2, %v1636_v52  ;;  %vm1046_vm7 = vcmp.gt.s32.totalorder %v3997_v39, %v1006_v0  ;;  %vm1051_vm14 = vcmp.gt.s32.totalorder %v3997_v39, %v3957_v20  ;;  %v1539_v20 = vsel %vm1075_vm2, %v3985_v35, 0.0 }
 0x1c4   : > { %v4019_v56 = vsel %vm1046_vm7, 0.0, %v3312_v29 }
 0x1c5   : > { %2118 = vrot.lane.b32.xlu0 %v961_v19, %s3311_s24 }
 0x1c6   : > { %v3962_v22 = vpop.permute.xlu0 %1026  ;;  %2920 = vmatmul.mubr.msk.f32.gmra.mrb[42].mxu1 %vm1075_vm2, %v1638_v12  ;;  %v1012_v28 = vpop.permute.xlu1 %1011 }
 0x1c7   : > { %2922 = vmatprep.mubr.msk.f32.mxu1 %vm1075_vm2, %v1640_v8  ;;  %vm1048_vm9 = vcmp.gt.s32.totalorder %v3997_v39, %v1012_v28  ;;  %vm1053_vm0 = vcmp.gt.s32.totalorder %v3997_v39, %v3962_v22 }
 0x1c8   : > { %v4038_v17 = vsel %vm1048_vm9, 0.0, %v3312_v29 }
 0x1ca   : > { %v3966_v23 = vpop.permute.xlu0 %1032  ;;  %2923 = vmatmul.mubr.msk.f32.gmra.mrb[44].mxu1 %vm1075_vm2, %v1642_v21  ;;  %v1018_v30 = vpop.permute.xlu1 %1017 }
 0x1cb   : > { %vm1050_vm11 = vcmp.gt.s32.totalorder %v3997_v39, %v1018_v30  ;;  %vm1055_vm3 = vcmp.gt.s32.totalorder %v3997_v39, %v3966_v23 }
 0x1cc   : > { %v4054_v28 = vsel %vm1050_vm11, 0.0, %v3312_v29 }
 0x1ce   : > { %v3969_v24 = vpop.permute.xlu0 %1038  ;;  %v3976_v60 = vpop.permute.xlu1 %1023 }
 0x1cf   : > { %vm1052_vm13 = vcmp.gt.s32.totalorder %v3997_v39, %v3976_v60  ;;  %vm1057_vm6 = vcmp.gt.s32.totalorder %v3997_v39, %v3969_v24  ;;  %v912_v24 = vadd.f32 %v3813_v54, %v3768_v36 }
 0x1d2   : > { %v1644_v26 = vpop.permute.xlu0 %1643  ;;  %v3978_v55 = vpop.permute.xlu1 %1029 }
 0x1d3   : > { %2925 = vmatprep.mubr.msk.f32.mxu1 %vm1075_vm2, %v1644_v26  ;;  %vm1054_vm15 = vcmp.gt.s32.totalorder %v3997_v39, %v3978_v55 }
 0x1d4   : > { %2926 = vmatmul.mubr.msk.f32.gmra.mrb[46].mxu1 %vm1075_vm2, %v1646_v32  ;;  %v4100_v55 = vsel %vm1054_vm15, 0.0, %v3312_v29 }
 0x1d6   : > { %v3982_v34 = vpop.permute.xlu1 %1035  ;;  %v4001_v51 = vpop.permute.xlu0 %2110 }
 0x1d7   : > { %vm1056_vm1 = vcmp.gt.s32.totalorder %v3997_v39, %v3982_v34 }
 0x1da   : > { %v3989_v37 = vpop.permute.xlu1 %1041 }
 0x1db   : > { %vm1058_vm5 = vcmp.gt.s32.totalorder %v3997_v39, %v3989_v37 }
 0x1de   : > { %v2212_v38 = vpop.permute.xlu1 %2211 }
 0x1df   : > { %v3992_v14 = vsel %vm1569_vm4, %v2212_v38, 0.0 }
 0x1e0   : > { %4525 = vst [vmem:[#allocation5_spill] sm:$0xff] %v3992_v14 }
 0x1e2   : > { %v4003_v42 = vpop.permute.xlu1 %2112 }
 0x1e4   : > { %1537 = vadd.xlane.f32.xlu0 %v1536_v15 }
 0x1e8   : > { %1534 = vadd.xlane.f32.xlu0 %v1533_v31 }
 0x1fe   : > { %2122 = vrot.lane.b32.xlu0 %v3985_v35, %s3311_s24 }
 0x203   : > { %v4021_v6 = vpop.xlane.xlu0 %1522 }
 0x207   : > { %v2115_v0 = vpop.permute.xlu0 %2114 }
 0x20f   : > { %v2815_v43 = vpop.f32.mrb[16].mxu1  ;;  %v4005_v44 = vpop.f32.mrb[32].mxu0 }
 0x210   : > { %v1318_v47 = vmul.f32 0.17677669, %v2815_v43  ;;  %v1238_v48 = vpop.f32.mrb[17].mxu1  ;;  %v2871_v49 = vpop.f32.mrb[33].mxu0  ;;  %v1542_v43 = vsel %vm1075_vm2, %v3893_v40, 0.0  ;;  %v4077_v40 = vsel %vm1052_vm13, 0.0, %v3312_v29 }
 0x211   : > { %v1317_v4 = vmul.f32 0.17677669, %v1238_v48  ;;  %v2164_v49 = vsel %vm1075_vm2, %v2115_v0, 0.0 }
 0x212   : > { %v4016_v52 = vadd.f32 %v1318_v47, %v4012_v1 }
 0x213   : > { %v4024_v53 = vadd.f32 %v1317_v4, %v4008_v45  ;;  %v2818_v8 = vpop.f32.mrb[18].mxu1  ;;  %v4069_v4 = vsel %vm1049_vm12, 0.0, %v3312_v29 }
 0x214   : > { %v1320_v9 = vmul.f32 0.17677669, %v2818_v8  ;;  %v1248_v63 = vpop.f32.mrb[19].mxu1  ;;  %v4030_v11 = vpop.xlane.xlu1 %1525 }
 0x215   : > { %v1319_v2 = vmul.f32 0.17677669, %v1248_v63 }
 0x216   : > { %v4033_v13 = vadd.f32 %v1320_v9, %v4019_v56 }
 0x217   : > { %v4041_v16 = vadd.f32 %v1319_v2, %v4027_v59  ;;  %v2821_v12 = vpop.f32.mrb[20].mxu1 }
 0x218   : > { %v1322_v19 = vmul.f32 0.17677669, %v2821_v12  ;;  %v1258_v21 = vpop.f32.mrb[21].mxu1  ;;  %v2117_v32 = vpop.permute.xlu1 %2116 }
 0x219   : > { %v1321_v25 = vmul.f32 0.17677669, %v1258_v21  ;;  %v2167_v26 = vsel %vm1075_vm2, %v2117_v32, 0.0 }
 0x21a   : > { %v4049_v3 = vadd.f32 %v1322_v19, %v4038_v17  ;;  %2168 = vadd.xlane.f32.xlu1 %v2167_v26 }
 0x21b   : > { %v4057_v15 = vadd.f32 %v1321_v25, %v4046_v27  ;;  %v2824_v30 = vpop.f32.mrb[22].mxu1  ;;  %v4092_v25 = vsel %vm1051_vm14, 0.0, %v3312_v29 }
 0x21c   : > { %v1423_v31 = vmax.f32 %v4016_v52, %v4049_v3  ;;  %v1324_v33 = vmul.f32 0.17677669, %v2824_v30  ;;  %v1268_v38 = vpop.f32.mrb[23].mxu1  ;;  %v2121_v47 = vpop.permute.xlu1 %2120 }
 0x21d   : > { %v1422_v18 = vmax.f32 %v4024_v53, %v4057_v15  ;;  %v1323_v48 = vmul.f32 0.17677669, %v1268_v38  ;;  %1543 = vadd.xlane.f32.xlu0 %v1542_v43  ;;  %v2173_v63 = vsel %vm1075_vm2, %v2121_v47, 0.0 }
 0x21e   : > { %v4072_v60 = vadd.f32 %v1324_v33, %v4054_v28  ;;  %2165 = vadd.xlane.f32.xlu1 %v2164_v49  ;;  %v4118_v49 = vsel %vm1056_vm1, 0.0, %v3312_v29 }
 0x21f   : > { %v4080_v8 = vadd.f32 %v1323_v48, %v4069_v4  ;;  %v2827_v9 = vpop.f32.mrb[24].mxu1  ;;  %v4110_v48 = vsel %vm1053_vm0, 0.0, %v3312_v29 }
 0x220   : > { %v1425_v2 = vmax.f32 %v4033_v13, %v4072_v60  ;;  %v1326_v12 = vmul.f32 0.17677669, %v2827_v9  ;;  %v1278_v19 = vpop.f32.mrb[25].mxu1 }
 0x221   : > { %v1424_v21 = vmax.f32 %v4041_v16, %v4080_v8  ;;  %v1325_v32 = vmul.f32 0.17677669, %v1278_v19  ;;  %1540 = vadd.xlane.f32.xlu0 %v1539_v20  ;;  %v4128_v20 = vsel %vm1055_vm3, 0.0, %v3312_v29 }
 0x222   : > { %v4095_v26 = vadd.f32 %v1326_v12, %v4077_v40  ;;  %2174 = vadd.xlane.f32.xlu1 %v2173_v63 }
 0x223   : > { %v4103_v35 = vadd.f32 %v1325_v32, %v4092_v25  ;;  %v2830_v0 = vpop.f32.mrb[26].mxu1  ;;  %v4136_v32 = vsel %vm1058_vm5, 0.0, %v3312_v29 }
 0x224   : > { %v1427_v30 = vmax.f32 %v1423_v31, %v4095_v26  ;;  %v1328_v33 = vmul.f32 0.17677669, %v2830_v0  ;;  %v1288_v38 = vpop.f32.mrb[27].mxu1 }
 0x225   : > { %v1426_v43 = vmax.f32 %v1422_v18, %v4103_v35  ;;  %v1327_v47 = vmul.f32 0.17677669, %v1288_v38 }
 0x226   : > { %v4113_v22 = vadd.f32 %v1328_v33, %v4100_v55 }
 0x227   : > { %v4121_v34 = vadd.f32 %v1327_v47, %v4110_v48  ;;  %v2833_v31 = vpop.f32.mrb[28].mxu1 }
 0x228   : > { %v1429_v18 = vmax.f32 %v1425_v2, %v4113_v22  ;;  %v1330_v9 = vmul.f32 0.17677669, %v2833_v31  ;;  %v1298_v63 = vpop.f32.mrb[29].mxu1  ;;  %v4144_v31 = vsel %vm1057_vm6, 0.0, %v3312_v29 }
 0x229   : > { %v1428_v12 = vmax.f32 %v1424_v21, %v4121_v34  ;;  %v1329_v19 = vmul.f32 0.17677669, %v1298_v63  ;;  %4526 = vst [vmem:[#allocation6_spill] sm:$0xff] %v4144_v31 }
 0x22a   : > { %v4131_v23 = vadd.f32 %v1330_v9, %v4118_v49 }
 0x22b   : > { %v4139_v37 = vadd.f32 %v1329_v19, %v4128_v20  ;;  %v2836_v2 = vpop.f32.mrb[30].mxu1 }
 0x22c   : > { %v1431_v0 = vmax.f32 %v1427_v30, %v4131_v23  ;;  %v1332_v21 = vmul.f32 0.17677669, %v2836_v2  ;;  %v1308_v33 = vpop.f32.mrb[31].mxu1 }
 0x22d   : > { %v1430_v38 = vmax.f32 %v1426_v43, %v4139_v37  ;;  %v1331_v47 = vmul.f32 0.17677669, %v1308_v33  ;;  %v965_v43 = vmul.f32 %v3781_v41, %v912_v24 }
 0x22e   : > { %v4147_v9 = vadd.f32 %v1332_v21, %v4136_v32 }
 0x22f   : > { %v1434_v39 = vmax.f32 %v1430_v38, %v1431_v0  ;;  %v4152_v63 = vadd.f32 %v1331_v47, %v4144_v31  ;;  %v4159_v0 = vmul.f32 0.17677669, %v4005_v44 }
 0x230   : > { %v1433_v30 = vmax.f32 %v1429_v18, %v4147_v9  ;;  %v2125_v18 = vpop.permute.xlu1 %2124 }
 0x231   : > { %v1432_v19 = vmax.f32 %v1428_v12, %v4152_v63 }
 0x233   : > { %v1435_v2 = vmax.f32 %v1432_v19, %v1433_v30 }
 0x235   : > { %v1436_v33 = vmax.f32 %v1434_v39, %v1435_v2  ;;  %v2179_v39 = vsel %vm1075_vm2, %v2125_v18, 0.0 }
 0x237   : > { %2126 = vrot.lane.b32.xlu0 %v965_v43, %s3311_s24  ;;  %v1437_v29 = vrot.slane %v1436_v33, 4 }
 0x238   : > { %v1532_v21 = vpop.xlane.xlu0 %1531 }
 0x239   : > { %v1438_v14 = vmax.f32 %v1436_v33, %v1437_v29 }
 0x23b   : > { %v1439_v46 = vrot.slane %v1438_v14, 2 }
 0x23c   : > { %v1529_v61 = vpop.xlane.xlu0 %1528 }
 0x23d   : > { %v1440_v54 = vmax.f32 %v1438_v14, %v1439_v46 }
 0x23f   : > { %v1441_v38 = vrot.slane %v1440_v54, 1 }
 0x240   : > { %v2119_v47 = vpop.permute.xlu0 %2118 }
 0x241   : > { %v1442_v31 = vmax.f32 %v1440_v54, %v1441_v38  ;;  %v2170_v12 = vsel %vm1075_vm2, %v2119_v47, 0.0 }
 0x242   : > { %2171 = vadd.xlane.f32.xlu1 %v2170_v12 }
 0x243   : > { %v4163_v24 = vmax.f32 %v1442_v31, %v4159_v0 }
 0x245   : > { %v4168_v30 = vrot.slane %v4163_v24, %v3543_v58  ;;  %v1496_v46 = vsub.f32 %v4159_v0, %v4163_v24 }
 0x246   : > { %2180 = vadd.xlane.f32.xlu1 %v2179_v39 }
 0x247   : > { %v1453_v14 = vsub.f32 %v4049_v3, %v4168_v30  ;;  %v1448_v44 = vsub.f32 %v4024_v53, %v4168_v30  ;;  %v1449_v31 = vsub.f32 %v4016_v52, %v4168_v30  ;;  %v1450_v19 = vsub.f32 %v4041_v16, %v4168_v30 }
 0x248   : > { %v1451_v2 = vsub.f32 %v4033_v13, %v4168_v30  ;;  %v1452_v33 = vsub.f32 %v4057_v15, %v4168_v30  ;;  %v1455_v29 = vsub.f32 %v4072_v60, %v4168_v30  ;;  %v1454_v53 = vsub.f32 %v4080_v8, %v4168_v30 }
 0x249   : > { %v1464_v54 = vmul.f32 1.442695, %v1448_v44  ;;  %v1466_v3 = vmul.f32 1.442695, %v1449_v31  ;;  %v1468_v38 = vmul.f32 1.442695, %v1450_v19  ;;  %v1456_v52 = vsub.f32 %v4103_v35, %v4168_v30 }
 0x24a   : > { %v1470_v47 = vmul.f32 1.442695, %v1451_v2  ;;  %v1457_v16 = vsub.f32 %v4095_v26, %v4168_v30  ;;  %v1458_v13 = vsub.f32 %v4121_v34, %v4168_v30  ;;  %v1459_v15 = vsub.f32 %v4113_v22, %v4168_v30 }
 0x24b   : > { %3227 = vpow2.f32 %v1464_v54  ;;  %v1460_v60 = vsub.f32 %v4139_v37, %v4168_v30  ;;  %v1461_v8 = vsub.f32 %v4131_v23, %v4168_v30  ;;  %v1472_v35 = vmul.f32 1.442695, %v1452_v33 }
 0x24c   : > { %3229 = vpow2.f32 %v1466_v3  ;;  %v1462_v26 = vsub.f32 %v4152_v63, %v4168_v30  ;;  %v1463_v18 = vsub.f32 %v4147_v9, %v4168_v30  ;;  %v1474_v34 = vmul.f32 1.442695, %v1453_v14 }
 0x24d   : > { %3231 = vpow2.f32 %v1468_v38  ;;  %v1476_v12 = vmul.f32 1.442695, %v1454_v53  ;;  %v1545_v22 = vsel %vm1075_vm2, %v965_v43, 0.0  ;;  %v1478_v39 = vmul.f32 1.442695, %v1455_v29 }
 0x24e   : > { %3233 = vpow2.f32 %v1470_v47  ;;  %v1480_v31 = vmul.f32 1.442695, %v1456_v52  ;;  %v1482_v30 = vmul.f32 1.442695, %v1457_v16  ;;  %v1484_v29 = vmul.f32 1.442695, %v1458_v13 }
 0x24f   : > { %3235 = vpow2.f32 %v1472_v35  ;;  %v1492_v13 = vmul.f32 1.442695, %v1462_v26  ;;  %v932_v26 = vadd.f32 %v3821_v62, %v3768_v36 }
 0x250   : > { %3237 = vpow2.f32 %v1474_v34  ;;  %v1488_v34 = vmul.f32 1.442695, %v1460_v60  ;;  %v1494_v60 = vmul.f32 1.442695, %v1463_v18 }
 0x251   : > { %3239 = vpow2.f32 %v1476_v12  ;;  %v4232_v18 = vmul.f32 %v3781_v41, %v932_v26 }
 0x252   : > { %3241 = vpow2.f32 %v1478_v39 }
 0x253   : > { %3243 = vpow2.f32 %v1480_v31 }
 0x254   : > { %3245 = vpow2.f32 %v1482_v30 }
 0x255   : > { %v3228_v37 = vpop.eup %3227  ;;  %3247 = vpow2.f32 %v1484_v29 }
 0x256   : > { %1546 = vadd.xlane.f32.xlu0 %v1545_v22  ;;  %v3230_v44 = vpop.eup %3229  ;;  %v1573_v23 = vmul.f32 %v3228_v37, %v4021_v6  ;;  %v1486_v6 = vmul.f32 1.442695, %v1459_v15  ;;  %v922_v22 = vadd.f32 %v3817_v57, %v3768_v36 }
 0x257   : > { %v3232_v19 = vpop.eup %3231  ;;  %v1499_v2 = vadd.f32 %v3230_v44, %v3228_v37  ;;  %v1574_v63 = vmul.f32 %v3230_v44, %v4030_v11 }
 0x258   : > { %v3234_v33 = vpop.eup %3233  ;;  %v1575_v9 = vmul.f32 %v3232_v19, %v1529_v61  ;;  %3249 = vpow2.f32 %v1486_v6  ;;  %v1490_v61 = vmul.f32 1.442695, %v1461_v8  ;;  %v4221_v8 = vmul.f32 %v3781_v41, %v922_v22 }
 0x259   : > { %v1500_v14 = vadd.f32 %v3232_v19, %v1499_v2  ;;  %v1576_v54 = vmul.f32 %v3234_v33, %v1532_v21  ;;  %v1589_v43 = vadd.f32 %v1574_v63, %v1573_v23  ;;  %v3236_v53 = vpop.eup %3235  ;;  %3251 = vpow2.f32 %v1488_v34 }
 0x25a   : > { %v3238_v35 = vpop.eup %3237  ;;  %3253 = vpow2.f32 %v1490_v61  ;;  %v942_v2 = vadd.f32 %v3948_v10, %v3768_v36  ;;  %v2129_v61 = vpop.permute.xlu1 %2128 }
 0x25b   : > { %v1501_v3 = vadd.f32 %v3234_v33, %v1500_v14  ;;  %v1590_v38 = vadd.f32 %v1589_v43, %v1575_v9  ;;  %v4207_v12 = vpop.eup %3239  ;;  %3255 = vpow2.f32 %v1492_v13  ;;  %v2185_v0 = vsel %vm1075_vm2, %v2129_v61, 0.0 }
 0x25c   : > { %v4210_v16 = vpop.eup %3241  ;;  %3257 = vpow2.f32 %v1494_v60  ;;  %v4245_v30 = vmul.f32 %v3781_v41, %v942_v2 }
 0x25d   : > { %v1502_v47 = vadd.f32 %v3236_v53, %v1501_v3  ;;  %v1591_v52 = vadd.f32 %v1590_v38, %v1576_v54  ;;  %v4215_v39 = vpop.eup %3243  ;;  %v1497_v3 = vmul.f32 1.442695, %v1496_v46 }
 0x25e   : > { %v4218_v44 = vpop.eup %3245 }
 0x25f   : > { %v1503_v11 = vadd.f32 %v3238_v35, %v1502_v47  ;;  %v4226_v57 = vpop.eup %3247  ;;  %3259 = vpow2.f32 %v1497_v3 }
 0x261   : > { %v1504_v21 = vadd.f32 %v4207_v12, %v1503_v11 }
 0x262   : > { %v4229_v19 = vpop.eup %3249 }
 0x263   : > { %v1505_v15 = vadd.f32 %v4210_v16, %v1504_v21  ;;  %v4239_v63 = vpop.eup %3251 }
 0x264   : > { %v4242_v9 = vpop.eup %3253 }
 0x265   : > { %v1506_v37 = vadd.f32 %v4215_v39, %v1505_v15  ;;  %v4250_v36 = vpop.eup %3255 }
 0x266   : > { %v4253_v29 = vpop.eup %3257 }
 0x267   : > { %v1507_v23 = vadd.f32 %v4218_v44, %v1506_v37 }
 0x269   : > { %v1508_v31 = vadd.f32 %v4226_v57, %v1507_v23  ;;  %v4265_v60 = vpop.eup %3259 }
 0x26b   : > { %v1509_v62 = vadd.f32 %v4229_v19, %v1508_v31 }
 0x26c   : > { %2130 = vrot.lane.b32.xlu0 %v4221_v8, %s3311_s24 }
 0x26d   : > { %v1510_v33 = vadd.f32 %v4239_v63, %v1509_v62 }
 0x26f   : > { %v1511_v14 = vadd.f32 %v4242_v9, %v1510_v33 }
 0x270   : > { %2134 = vrot.lane.b32.xlu0 %v4232_v18, %s3311_s24 }
 0x271   : > { %v1538_v10 = vpop.xlane.xlu0 %1537  ;;  %v1512_v43 = vadd.f32 %v4250_v36, %v1511_v14 }
 0x272   : > { %v1578_v54 = vmul.f32 %v3238_v35, %v1538_v10 }
 0x273   : > { %v1513_v41 = vadd.f32 %v4253_v29, %v1512_v43 }
 0x274   : > { %2138 = vrot.lane.b32.xlu0 %v4245_v30, %s3311_s24 }
 0x275   : > { %v1535_v38 = vpop.xlane.xlu0 %1534  ;;  %v1514_v47 = vrot.slane %v1513_v41, 4 }
 0x276   : > { %v1577_v6 = vmul.f32 %v3236_v53, %v1535_v38 }
 0x277   : > { %v1515_v11 = vadd.f32 %v1514_v47, %v1513_v41 }
 0x278   : > { %v1592_v34 = vadd.f32 %v1591_v52, %v1577_v6 }
 0x279   : > { %v2123_v35 = vpop.permute.xlu0 %2122  ;;  %v1516_v22 = vrot.slane %v1515_v11, 2 }
 0x27a   : > { %v2176_v21 = vsel %vm1075_vm2, %v2123_v35, 0.0  ;;  %v4262_v13 = vadd.f32 %v1592_v34, %v1578_v54 }
 0x27b   : > { %2177 = vadd.xlane.f32.xlu1 %v2176_v21  ;;  %v1517_v24 = vadd.f32 %v1516_v22, %v1515_v11 }
 0x27d   : > { %v1518_v46 = vrot.slane %v1517_v24, 1 }
 0x27f   : > { %2186 = vadd.xlane.f32.xlu1 %v2185_v0  ;;  %v1519_v15 = vadd.f32 %v1518_v46, %v1517_v24 }
 0x281   : > { %v4268_v53 = vadd.f32 %v4265_v60, %v1519_v15 }
 0x284   : > { %v4270_v52 = vpop.f32.mrb[34].mxu0 }
 0x285   : > { %v2906_v37 = vpop.f32.mrb[32].mxu1  ;;  %v2962_v26 = vpop.f32.mrb[35].mxu0 }
 0x286   : > { %v1889_v23 = vmul.f32 0.17677669, %v2906_v37  ;;  %v1809_v31 = vpop.f32.mrb[33].mxu1 }
 0x287   : > { %v1888_v2 = vmul.f32 0.17677669, %v1809_v31 }
 0x288   : > { %v4273_v62 = vadd.f32 %v1889_v23, %v4012_v1 }
 0x289   : > { %v4276_v33 = vadd.f32 %v1888_v2, %v4008_v45  ;;  %v2909_v14 = vpop.f32.mrb[34].mxu1 }
 0x28a   : > { %v1891_v10 = vmul.f32 0.17677669, %v2909_v14  ;;  %v1819_v54 = vpop.f32.mrb[35].mxu1 }
 0x28b   : > { %v1890_v43 = vmul.f32 0.17677669, %v1819_v54 }
 0x28c   : > { %v4279_v3 = vadd.f32 %v1891_v10, %v4019_v56  ;;  %v2161_v10 = vsel %vm1075_vm2, %v4003_v42, 0.0 }
 0x28d   : > { %v4282_v41 = vadd.f32 %v1890_v43, %v4027_v59  ;;  %v2912_v38 = vpop.f32.mrb[36].mxu1  ;;  %v1548_v59 = vsel %vm1075_vm2, %v3900_v50, 0.0  ;;  %v1551_v50 = vsel %vm1075_vm2, %v4221_v8, 0.0 }
 0x28e   : > { %v1893_v6 = vmul.f32 0.17677669, %v2912_v38  ;;  %v1829_v47 = vpop.f32.mrb[37].mxu1 }
 0x28f   : > { %v1892_v34 = vmul.f32 0.17677669, %v1829_v47 }
 0x290   : > { %v4285_v1 = vadd.f32 %v1893_v6, %v4038_v17 }
 0x291   : > { %v4288_v45 = vadd.f32 %v1892_v34, %v4046_v27  ;;  %v2915_v11 = vpop.f32.mrb[38].mxu1  ;;  %v2158_v34 = vsel %vm1075_vm2, %v4001_v51, 0.0  ;;  %v1557_v51 = vsel %vm1075_vm2, %v4232_v18, 0.0 }
 0x292   : > { %v1996_v35 = vmax.f32 %v4273_v62, %v4285_v1  ;;  %v1895_v61 = vmul.f32 0.17677669, %v2915_v11  ;;  %v1839_v56 = vpop.f32.mrb[39].mxu1 }
 0x293   : > { %v1995_v21 = vmax.f32 %v4276_v33, %v4288_v45  ;;  %v1894_v22 = vmul.f32 0.17677669, %v1839_v56  ;;  %1549 = vadd.xlane.f32.xlu0 %v1548_v59 }
 0x294   : > { %v4297_v17 = vadd.f32 %v1895_v61, %v4054_v28  ;;  %v1554_v61 = vsel %vm1075_vm2, %v3912_v5, 0.0  ;;  %v4527_v5 = vld [vmem:[#allocation6_spill] sm:$0xff] }
 0x295   : > { %v4300_v27 = vadd.f32 %v1894_v22, %v4069_v4  ;;  %v2918_v0 = vpop.f32.mrb[40].mxu1 }
 0x296   : > { %v1998_v24 = vmax.f32 %v4279_v3, %v4297_v17  ;;  %v1897_v46 = vmul.f32 0.17677669, %v2918_v0  ;;  %v1849_v15 = vpop.f32.mrb[41].mxu1 }
 0x297   : > { %v1997_v37 = vmax.f32 %v4282_v41, %v4300_v27  ;;  %v1896_v26 = vmul.f32 0.17677669, %v1849_v15  ;;  %1552 = vadd.xlane.f32.xlu0 %v1551_v50 }
 0x298   : > { %v4309_v28 = vadd.f32 %v1897_v46, %v4077_v40  ;;  %v1560_v46 = vsel %vm1075_vm2, %v3919_v7, 0.0 }
 0x299   : > { %v4312_v4 = vadd.f32 %v1896_v26, %v4092_v25  ;;  %v2921_v23 = vpop.f32.mrb[42].mxu1 }
 0x29a   : > { %v2000_v31 = vmax.f32 %v1996_v35, %v4309_v28  ;;  %v1899_v2 = vmul.f32 0.17677669, %v2921_v23  ;;  %v1859_v14 = vpop.f32.mrb[43].mxu1  ;;  %v1563_v23 = vsel %vm1075_vm2, %v4245_v30, 0.0  ;;  %v4529_v30 = vld [vmem:[#allocation3_spill] sm:$0xff] }
 0x29b   : > { %v1999_v8 = vmax.f32 %v1995_v21, %v4312_v4  ;;  %v1898_v54 = vmul.f32 0.17677669, %v1859_v14  ;;  %2162 = vadd.xlane.f32.xlu0 %v2161_v10  ;;  %v4528_v10 = vld [vmem:[#allocation4_spill] sm:$0xff] }
 0x29c   : > { %v4319_v43 = vadd.f32 %v1899_v2, %v4100_v55 }
 0x29d   : > { %v4322_v40 = vadd.f32 %v1898_v54, %v4110_v48  ;;  %v2924_v25 = vpop.f32.mrb[44].mxu1 }
 0x29e   : > { %v2002_v38 = vmax.f32 %v1998_v24, %v4319_v43  ;;  %v1901_v6 = vmul.f32 0.17677669, %v2924_v25  ;;  %v1869_v47 = vpop.f32.mrb[45].mxu1 }
 0x29f   : > { %v2001_v42 = vmax.f32 %v1997_v37, %v4322_v40  ;;  %v1900_v11 = vmul.f32 0.17677669, %v1869_v47  ;;  %2159 = vadd.xlane.f32.xlu0 %v2158_v34 }
 0x2a0   : > { %v4329_v35 = vadd.f32 %v1901_v6, %v4118_v49  ;;  %v1570_v6 = vsel %vm1569_vm4, %v4529_v30, 0.0 }
 0x2a1   : > { %v4332_v55 = vadd.f32 %v1900_v11, %v4128_v20  ;;  %v4364_v11 = vmul.f32 0.17677669, %v4270_v52 }
 0x2a2   : > { %v2004_v48 = vmax.f32 %v2000_v31, %v4329_v35 }
 0x2a3   : > { %v2003_v56 = vmax.f32 %v1999_v8, %v4332_v55  ;;  %1555 = vadd.xlane.f32.xlu0 %v1554_v61 }
 0x2a5   : > { %v2007_v59 = vmax.f32 %v2003_v56, %v2004_v48 }
 0x2a7   : > { %1558 = vadd.xlane.f32.xlu0 %v1557_v51  ;;  %v2927_v21 = vpop.f32.mrb[46].mxu1 }
 0x2a8   : > { %v1903_v22 = vmul.f32 0.17677669, %v2927_v21  ;;  %v1879_v49 = vpop.f32.mrb[47].mxu1 }
 0x2a9   : > { %v1902_v0 = vmul.f32 0.17677669, %v1879_v49 }
 0x2aa   : > { %v4341_v20 = vadd.f32 %v1903_v22, %v4136_v32  ;;  %v1544_v24 = vpop.xlane.xlu0 %1543 }
 0x2ab   : > { %v4346_v15 = vadd.f32 %v1902_v0, %v4527_v5  ;;  %v1580_v50 = vmul.f32 %v4210_v16, %v1544_v24  ;;  %1561 = vadd.xlane.f32.xlu0 %v1560_v46  ;;  %v1566_v16 = vsel %vm1075_vm2, %v4528_v10, 0.0  ;;  %v2259_v5 = vld [vmem:[#allocation2] sm:$0x1] }
 0x2ac   : > { %v2006_v18 = vmax.f32 %v2002_v38, %v4341_v20  ;;  %v2133_v38 = vpop.permute.xlu1 %2132 }
 0x2ad   : > { %v2005_v37 = vmax.f32 %v2001_v42, %v4346_v15  ;;  %v2191_v47 = vsel %vm1075_vm2, %v2133_v38, 0.0 }
 0x2ae   : > { %v1541_v26 = vpop.xlane.xlu0 %1540 }
 0x2af   : > { %v2008_v32 = vmax.f32 %v2005_v37, %v2006_v18  ;;  %v1579_v31 = vmul.f32 %v4207_v12, %v1541_v26  ;;  %1564 = vadd.xlane.f32.xlu0 %v1563_v23 }
 0x2b1   : > { %v2009_v2 = vmax.f32 %v2007_v59, %v2008_v32  ;;  %v1594_v7 = vadd.f32 %v4262_v13, %v1579_v31 }
 0x2b2   : > { %v2127_v14 = vpop.permute.xlu0 %2126 }
 0x2b3   : > { %v2010_v8 = vrot.slane %v2009_v2, 4  ;;  %1567 = vadd.xlane.f32.xlu0 %v1566_v16  ;;  %v2182_v54 = vsel %vm1075_vm2, %v2127_v14, 0.0  ;;  %v4358_v25 = vadd.f32 %v1594_v7, %v1580_v50 }
 0x2b4   : > { %2183 = vadd.xlane.f32.xlu1 %v2182_v54 }
 0x2b5   : > { %v2011_v12 = vmax.f32 %v2009_v2, %v2010_v8 }
 0x2b7   : > { %v2012_v34 = vrot.slane %v2011_v12, 2  ;;  %1571 = vadd.xlane.f32.xlu0 %v1570_v6 }
 0x2b8   : > { %2192 = vadd.xlane.f32.xlu1 %v2191_v47 }
 0x2b9   : > { %v2013_v13 = vmax.f32 %v2011_v12, %v2012_v34 }
 0x2bb   : > { %v2014_v42 = vrot.slane %v2013_v13, 1 }
 0x2bd   : > { %v2015_v48 = vmax.f32 %v2013_v13, %v2014_v42 }
 0x2bf   : > { %v4367_v61 = vmax.f32 %v2015_v48, %v4364_v11 }
 0x2c1   : > { %v4371_v56 = vrot.slane %v4367_v61, %v3543_v58  ;;  %v2069_v59 = vsub.f32 %v4364_v11, %v4367_v61 }
 0x2c3   : > { %v2035_v51 = vsub.f32 %v4346_v15, %v4371_v56  ;;  %v2023_v21 = vsub.f32 %v4282_v41, %v4371_v56  ;;  %v2026_v52 = vsub.f32 %v4285_v1, %v4371_v56  ;;  %v2025_v22 = vsub.f32 %v4288_v45, %v4371_v56 }
 0x2c4   : > { %v2028_v49 = vsub.f32 %v4297_v17, %v4371_v56  ;;  %v2027_v0 = vsub.f32 %v4300_v27, %v4371_v56  ;;  %v2030_v24 = vsub.f32 %v4309_v28, %v4371_v56  ;;  %v2022_v46 = vsub.f32 %v4273_v62, %v4371_v56 }
 0x2c5   : > { %v2021_v41 = vsub.f32 %v4276_v33, %v4371_v56  ;;  %v2024_v1 = vsub.f32 %v4279_v3, %v4371_v56  ;;  %v2029_v45 = vsub.f32 %v4312_v4, %v4371_v56  ;;  %v2032_v17 = vsub.f32 %v4319_v43, %v4371_v56 }
 0x2c6   : > { %v2031_v27 = vsub.f32 %v4322_v40, %v4371_v56  ;;  %v2034_v28 = vsub.f32 %v4329_v35, %v4371_v56  ;;  %v2033_v62 = vsub.f32 %v4332_v55, %v4371_v56  ;;  %v2039_v33 = vmul.f32 1.442695, %v2022_v46  ;;  %v2137_v46 = vpop.permute.xlu1 %2136 }
 0x2c7   : > { %v2036_v3 = vsub.f32 %v4341_v20, %v4371_v56  ;;  %v2037_v15 = vmul.f32 1.442695, %v2021_v41  ;;  %v2041_v50 = vmul.f32 1.442695, %v2023_v21  ;;  %v2043_v4 = vmul.f32 1.442695, %v2024_v1 }
 0x2c8   : > { %3261 = vpow2.f32 %v2039_v33  ;;  %v2045_v43 = vmul.f32 1.442695, %v2025_v22  ;;  %v2047_v40 = vmul.f32 1.442695, %v2026_v52  ;;  %v2049_v35 = vmul.f32 1.442695, %v2027_v0 }
 0x2c9   : > { %3263 = vpow2.f32 %v2037_v15  ;;  %v2051_v18 = vmul.f32 1.442695, %v2028_v49  ;;  %v2053_v20 = vmul.f32 1.442695, %v2029_v45  ;;  %v2055_v32 = vmul.f32 1.442695, %v2030_v24 }
 0x2ca   : > { %3265 = vpow2.f32 %v2041_v50  ;;  %v2057_v7 = vmul.f32 1.442695, %v2031_v27  ;;  %v2059_v16 = vmul.f32 1.442695, %v2032_v17  ;;  %v2061_v38 = vmul.f32 1.442695, %v2033_v62 }
 0x2cb   : > { %3267 = vpow2.f32 %v2043_v4  ;;  %v2063_v47 = vmul.f32 1.442695, %v2034_v28  ;;  %v2065_v48 = vmul.f32 1.442695, %v2035_v51  ;;  %v2067_v49 = vmul.f32 1.442695, %v2036_v3 }
 0x2cc   : > { %3269 = vpow2.f32 %v2045_v43  ;;  %v2197_v51 = vsel %vm1075_vm2, %v2137_v46, 0.0 }
 0x2cd   : > { %2262 = vperm.xlu0 %3226, %v2259_v5   ;;  %3271 = vpow2.f32 %v2047_v40 }
 0x2ce   : > { %3273 = vpow2.f32 %v2049_v35  ;;  %v2070_v35 = vmul.f32 1.442695, %v2069_v59 }
 0x2cf   : > { %3275 = vpow2.f32 %v2051_v18 }
 0x2d0   : > { %3277 = vpow2.f32 %v2053_v20  ;;  %v2141_v20 = vpop.permute.xlu1 %2140 }
 0x2d1   : > { %3279 = vpow2.f32 %v2055_v32 }
 0x2d2   : > { %v4407_v55 = vpop.eup %3261  ;;  %3281 = vpow2.f32 %v2057_v7 }
 0x2d3   : > { %v4409_v37 = vpop.eup %3263  ;;  %3283 = vpow2.f32 %v2059_v16 }
 0x2d4   : > { %v2072_v26 = vadd.f32 %v4409_v37, %v4407_v55  ;;  %v4413_v23 = vpop.eup %3265  ;;  %3285 = vpow2.f32 %v2061_v38  ;;  %v2169_v61 = vpop.xlane.xlu1 %2168 }
 0x2d5   : > { %v4416_v2 = vpop.eup %3267  ;;  %3287 = vpow2.f32 %v2063_v47 }
 0x2d6   : > { %v2073_v31 = vadd.f32 %v4413_v23, %v2072_v26  ;;  %v4419_v10 = vpop.eup %3269  ;;  %3289 = vpow2.f32 %v2065_v48  ;;  %v2203_v26 = vsel %vm1075_vm2, %v2141_v20, 0.0 }
 0x2d7   : > { %v4422_v54 = vpop.eup %3271  ;;  %3291 = vpow2.f32 %v2067_v49 }
 0x2d8   : > { %v2074_v14 = vadd.f32 %v4416_v2, %v2073_v31  ;;  %v4425_v6 = vpop.eup %3273  ;;  %3293 = vpow2.f32 %v2070_v35  ;;  %v2166_v47 = vpop.xlane.xlu1 %2165 }
 0x2d9   : > { %v4429_v42 = vpop.eup %3275  ;;  %3295 = vrcp.f32 %v4268_v53 }
 0x2da   : > { %v2075_v8 = vadd.f32 %v4419_v10, %v2074_v14  ;;  %v4433_v52 = vpop.eup %3277  ;;  %v4530_v14 = vld [vmem:[#allocation5_spill] sm:$0xff] }
 0x2dc   : > { %v2076_v30 = vadd.f32 %v4422_v54, %v2075_v8 }
 0x2de   : > { %v2077_v13 = vadd.f32 %v4425_v6, %v2076_v30 }
 0x2e0   : > { %v2078_v21 = vadd.f32 %v4429_v42, %v2077_v13 }
 0x2e2   : > { %v2079_v24 = vadd.f32 %v4433_v52, %v2078_v21  ;;  %v2175_v21 = vpop.xlane.xlu1 %2174 }
 0x2e3   : > { %v1547_v12 = vpop.xlane.xlu0 %1546 }
 0x2e4   : > { %v1581_v34 = vmul.f32 %v4215_v39, %v1547_v12  ;;  %v4437_v39 = vpop.eup %3279 }
 0x2e5   : > { %v4441_v41 = vpop.eup %3281 }
 0x2e6   : > { %v1596_v56 = vadd.f32 %v4358_v25, %v1581_v34  ;;  %v2080_v25 = vadd.f32 %v4437_v39, %v2079_v24  ;;  %v4444_v17 = vpop.eup %3283 }
 0x2e7   : > { %v2131_v22 = vpop.permute.xlu0 %2130  ;;  %v4447_v28 = vpop.eup %3285 }
 0x2e8   : > { %v2188_v0 = vsel %vm1075_vm2, %v2131_v22, 0.0  ;;  %v2081_v45 = vadd.f32 %v4441_v41, %v2080_v25  ;;  %v4451_v3 = vpop.eup %3287  ;;  %v2219_v25 = vmul.f32 %v4413_v23, %v2166_v47 }
 0x2e9   : > { %2189 = vadd.xlane.f32.xlu1 %v2188_v0  ;;  %v4455_v4 = vpop.eup %3289  ;;  %v2172_v0 = vpop.xlane.xlu1 %2171 }
 0x2ea   : > { %v2082_v27 = vadd.f32 %v4444_v17, %v2081_v45  ;;  %v4458_v40 = vpop.eup %3291 }
 0x2eb   : > { %v2135_v1 = vpop.permute.xlu0 %2134  ;;  %v4466_v30 = vpop.eup %3293 }
 0x2ec   : > { %v2194_v5 = vsel %vm1075_vm2, %v2135_v1, 0.0  ;;  %v2083_v33 = vadd.f32 %v4447_v28, %v2082_v27 }
 0x2ed   : > { %2198 = vadd.xlane.f32.xlu1 %v2197_v51  ;;  %v2181_v45 = vpop.xlane.xlu1 %2180 }
 0x2ee   : > { %v2084_v50 = vadd.f32 %v4451_v3, %v2083_v33 }
 0x2ef   : > { %v2139_v62 = vpop.permute.xlu0 %2138 }
 0x2f0   : > { %v2200_v15 = vsel %vm1075_vm2, %v2139_v62, 0.0  ;;  %v2085_v43 = vadd.f32 %v4455_v4, %v2084_v50 }
 0x2f1   : > { %2195 = vadd.xlane.f32.xlu1 %v2194_v5 }
 0x2f2   : > { %v2086_v18 = vadd.f32 %v4458_v40, %v2085_v43 }
 0x2f4   : > { %v2087_v32 = vrot.slane %v2086_v18, 4 }
 0x2f5   : > { %2201 = vadd.xlane.f32.xlu1 %v2200_v15 }
 0x2f6   : > { %v2088_v31 = vadd.f32 %v2087_v32, %v2086_v18 }
 0x2f8   : > { %v2089_v7 = vrot.slane %v2088_v31, 2 }
 0x2f9   : > { %2204 = vadd.xlane.f32.xlu1 %v2203_v26 }
 0x2fa   : > { %v2090_v16 = vadd.f32 %v2089_v7, %v2088_v31 }
 0x2fc   : > { %v2091_v8 = vrot.slane %v2090_v16, 1 }
 0x2fd   : > { %2215 = vadd.xlane.f32.xlu1 %v4530_v14 }
 0x2fe   : > { %v2092_v38 = vadd.f32 %v2091_v8, %v2090_v16 }
 0x300   : > { %v4469_v11 = vadd.f32 %v4466_v30, %v2092_v38 }
 0x302   : > { %3297 = vrcp.f32 %v4469_v11 }
 0x308   : > { %v2178_v15 = vpop.xlane.xlu1 %2177 }
 0x309   : > { %v2223_v23 = vmul.f32 %v4425_v6, %v2178_v15 }
 0x30c   : > { %v2187_v7 = vpop.xlane.xlu1 %2186 }
 0x320   : > { %v1550_v59 = vpop.xlane.xlu0 %1549 }
 0x321   : > { %v1582_v12 = vmul.f32 %v4218_v44, %v1550_v59  ;;  %v2220_v44 = vmul.f32 %v4416_v2, %v2169_v61  ;;  %v2224_v2 = vmul.f32 %v4429_v42, %v2181_v45  ;;  %v2226_v61 = vmul.f32 %v4437_v39, %v2187_v7 }
 0x323   : > { %v1597_v34 = vadd.f32 %v1596_v56, %v1582_v12 }
 0x324   : > { %v1553_v13 = vpop.xlane.xlu0 %1552 }
 0x325   : > { %v1583_v48 = vmul.f32 %v4226_v57, %v1553_v13  ;;  %v2221_v57 = vmul.f32 %v4419_v10, %v2172_v0 }
 0x327   : > { %v1598_v22 = vadd.f32 %v1597_v34, %v1583_v48 }
 0x328   : > { %v2163_v49 = vpop.xlane.xlu0 %2162 }
 0x329   : > { %v2218_v46 = vmul.f32 %v4407_v55, %v2163_v49  ;;  %v2222_v55 = vmul.f32 %v4422_v54, %v2175_v21 }
 0x32c   : > { %v2160_v24 = vpop.xlane.xlu0 %2159 }
 0x32d   : > { %v2217_v51 = vmul.f32 %v4409_v37, %v2160_v24 }
 0x32f   : > { %v2233_v1 = vadd.f32 %v2218_v46, %v2217_v51 }
 0x330   : > { %v1556_v27 = vpop.xlane.xlu0 %1555 }
 0x331   : > { %v2234_v56 = vadd.f32 %v2233_v1, %v2219_v25  ;;  %v1584_v62 = vmul.f32 %v4229_v19, %v1556_v27 }
 0x333   : > { %v2235_v5 = vadd.f32 %v2234_v56, %v2220_v44  ;;  %v1599_v33 = vadd.f32 %v1598_v22, %v1584_v62  ;;  %v3296_v22 = vpop.eup %3295 }
 0x334   : > { %v1559_v50 = vpop.xlane.xlu0 %1558 }
 0x335   : > { %v2236_v43 = vadd.f32 %v2235_v5, %v2221_v57  ;;  %v1585_v37 = vmul.f32 %v4239_v63, %v1559_v50 }
 0x337   : > { %v1600_v35 = vadd.f32 %v1599_v33, %v1585_v37  ;;  %v2237_v18 = vadd.f32 %v2236_v43, %v2222_v55 }
 0x338   : > { %v1562_v20 = vpop.xlane.xlu0 %1561 }
 0x339   : > { %v1586_v19 = vmul.f32 %v4242_v9, %v1562_v20  ;;  %v2238_v26 = vadd.f32 %v2237_v18, %v2223_v23 }
 0x33b   : > { %v1601_v10 = vadd.f32 %v1600_v35, %v1586_v19  ;;  %v2239_v32 = vadd.f32 %v2238_v26, %v2224_v2 }
 0x33c   : > { %v1565_v31 = vpop.xlane.xlu0 %1564 }
 0x33d   : > { %v1587_v14 = vmul.f32 %v4250_v36, %v1565_v31 }
 0x33f   : > { %v1602_v54 = vadd.f32 %v1601_v10, %v1587_v14 }
 0x340   : > { %v1568_v16 = vpop.xlane.xlu0 %1567 }
 0x341   : > { %v1588_v63 = vmul.f32 %v4253_v29, %v1568_v16  ;;  %v2184_v8 = vpop.xlane.xlu1 %2183 }
 0x342   : > { %v2225_v6 = vmul.f32 %v4433_v52, %v2184_v8 }
 0x343   : > { %v1603_v38 = vadd.f32 %v1602_v54, %v1588_v63 }
 0x344   : > { %v2240_v42 = vadd.f32 %v2239_v32, %v2225_v6  ;;  %v1572_v13 = vpop.xlane.xlu0 %1571 }
 0x345   : > { %v1604_v59 = vrot.slane %v1603_v38, 4  ;;  %v1610_v21 = vmul.f32 %v4265_v60, %v1572_v13  ;;  %v2193_v52 = vpop.xlane.xlu1 %2192 }
 0x346   : > { %v2241_v9 = vadd.f32 %v2240_v42, %v2226_v61  ;;  %v2228_v24 = vmul.f32 %v4444_v17, %v2193_v52 }
 0x347   : > { %v1605_v12 = vadd.f32 %v1604_v59, %v1603_v38 }
 0x349   : > { %v1606_v47 = vrot.slane %v1605_v12, 2 }
 0x34b   : > { %v1607_v34 = vadd.f32 %v1606_v47, %v1605_v12 }
 0x34c   : > { %v2263_v23 = vpop.permute.xlu0 %2262 }
 0x34d   : > { %v1608_v36 = vrot.slane %v1607_v34, 1  ;;  %v2268_v18 = vrot.slane %v2263_v23, %v3543_v58 }
 0x34f   : > { %v1609_v48 = vadd.f32 %v1608_v36, %v1607_v34 }
 0x351   : > { %v1611_v29 = vadd.f32 %v1610_v21, %v1609_v48 }
 0x353   : > { %v1613_v49 = vmul.f32 %v3296_v22, %v1611_v29 }
 0x376   : > { %v2190_v0 = vpop.xlane.xlu1 %2189 }
 0x377   : > { %v2227_v39 = vmul.f32 %v4441_v41, %v2190_v0 }
 0x379   : > { %v2242_v46 = vadd.f32 %v2241_v9, %v2227_v39 }
 0x37a   : > { %v2199_v51 = vpop.xlane.xlu1 %2198 }
 0x37b   : > { %v2243_v25 = vadd.f32 %v2242_v46, %v2228_v24  ;;  %v2230_v45 = vmul.f32 %v4451_v3, %v2199_v51 }
 0x37e   : > { %v2196_v53 = vpop.xlane.xlu1 %2195 }
 0x37f   : > { %v2229_v1 = vmul.f32 %v4447_v28, %v2196_v53 }
 0x381   : > { %v2244_v27 = vadd.f32 %v2243_v25, %v2229_v1 }
 0x382   : > { %v2202_v44 = vpop.xlane.xlu1 %2201 }
 0x383   : > { %v2231_v60 = vmul.f32 %v4455_v4, %v2202_v44  ;;  %v2245_v56 = vadd.f32 %v2244_v27, %v2230_v45  ;;  %v3298_v4 = vpop.eup %3297 }
 0x385   : > { %v2246_v62 = vadd.f32 %v2245_v56, %v2231_v60 }
 0x386   : > { %v2205_v57 = vpop.xlane.xlu1 %2204 }
 0x387   : > { %v2232_v5 = vmul.f32 %v4458_v40, %v2205_v57 }
 0x389   : > { %v2247_v41 = vadd.f32 %v2246_v62, %v2232_v5 }
 0x38a   : > { %v2216_v28 = vpop.xlane.xlu1 %2215 }
 0x38b   : > { %v2248_v17 = vrot.slane %v2247_v41, 4  ;;  %v2254_v43 = vmul.f32 %v4466_v30, %v2216_v28 }
 0x38d   : > { %v2249_v33 = vadd.f32 %v2248_v17, %v2247_v41 }
 0x38f   : > { %v2250_v15 = vrot.slane %v2249_v33, 2 }
 0x391   : > { %v2251_v50 = vadd.f32 %v2250_v15, %v2249_v33 }
 0x393   : > { %v2252_v55 = vrot.slane %v2251_v50, 1 }
 0x395   : > { %v2253_v3 = vadd.f32 %v2252_v55, %v2251_v50 }
 0x397   : > { %v2255_v37 = vadd.f32 %v2254_v43, %v2253_v3 }
 0x399   : > { %v2257_v35 = vmul.f32 %v3298_v4, %v2255_v37 }
 0x39b   : > { %v2258_v40 = vadd.f32 %v2257_v35, %v1613_v49 }
 0x39d   : > { %v2269_v20 = vadd.f32 %v2268_v18, %v2258_v40 }
 0x39f   : > { %2270 = vst [vmem:[%s404_s17] sm:$0x1] %v2269_v20 }
 0x3a0 PF: > { %s23_s19 = sadd.s32 1, %s3305_s19  }
 0x3a1   : > { %p20_p4 = scmp.ge.s32.totalorder %s23_s19, 4  }
 0x3a3   :  { %22 = sbr.rel (!%p20_p4) target bundleno = 3 (0x3), region = 97 }

</bundles_post_ra>
